<compile_context>
chip_gen: v5e
topology: v5e:2x2
jax: 0.10.0
libtpu: 0.0.40
codegen_flags: <defaults>
</compile_context>

<pallas_src>
import functools

import jax
import jax.numpy as jnp
from jax import lax
from jax.experimental import pallas as pl
from jax.experimental.pallas import tpu as pltpu

LANE = 128


def _round_up(n, m):
    return ((n + m - 1) // m) * m


def _vmem_limit_bytes():
    """~75% of physical VMEM (v5e/v6e: 96 MiB, v7x: 48 MiB); conservative fallback."""
    try:
        cap = int(pltpu.get_tpu_info().vmem_capacity_bytes)
    except Exception:
        return 64 * 1024 * 1024
    return min((cap * 3) // 4, 112 * 1024 * 1024)


def _gln(c, gamma, beta, inv_count, eps):
    """GlobalLayerNorm over an (L, h_pad) f32 tile, affine folded to one mul-add.

    Padded lanes of `c`, gamma and beta are zero, so dividing by the REAL element
    count (L * hid_ch) reproduces the unpadded statistics and padded lanes stay 0.
    One-pass E[x^2]-E[x]^2 in f32 (adequate at the 1e-2 tolerance used here).
    """
    s = jnp.sum(c, keepdims=True)                      # (1, 1)
    ss = jnp.sum(c * c, keepdims=True)                 # (1, 1)
    mean = s * inv_count
    var = ss * inv_count - mean * mean
    inv = lax.rsqrt(jnp.maximum(var, 0.0) + eps)
    scale = gamma * inv                                # (1, h_pad)
    shift = beta - mean * scale                        # (1, h_pad)
    return c * scale + shift


def _separation_kernel(starts_ref, x_ref, w1_ref, pvec_ref, wso_ref, bso_ref,
                       skip_ref,
                       xacc_ref, skipacc_ref, dwpad_ref,
                       *, nblk, ksize, eps, hid_ch, max_pad, rows):
    blk = pl.program_id(1)
    _, L, c_pad = x_ref.shape
    h_pad = w1_ref.shape[1]
    inv_count = 1.0 / float(L * hid_ch)                # GLN divisor: REAL channels

    # ---- first block of each batch group: init on-chip state ----------------
    @pl.when(blk == 0)
    def _():
        xacc_ref[...] = x_ref[...].astype(jnp.float32)
        skipacc_ref[...] = jnp.zeros_like(skipacc_ref)
        if max_pad:
            # Borders supply the depthwise conv's zero padding; the center region
            # is overwritten by every block, the borders never are.
            z = jnp.zeros((rows, max_pad, h_pad), jnp.float32)
            dwpad_ref[:, 0:max_pad, :] = z
            dwpad_ref[:, max_pad + L:, :] = z

    # ---- this block's weights (streamed per grid step) ----------------------
    w1 = w1_ref[...]                                   # (c_pad, h_pad)   bf16
    wso = wso_ref[...]                                 # (h_pad, 2*c_pad) bf16
    bso = bso_ref[...]                                 # (1, 2*c_pad)     f32
    b1, g1, be1, a1 = (pvec_ref[i:i + 1, :] for i in range(4))
    dwb, g2, be2, a2 = (pvec_ref[i:i + 1, :] for i in range(4, 8))

    center = (ksize - 1) // 2

    # Two independent per-row chains: lets the scheduler overlap one row's MXU
    # matmuls with the other row's VPU/XLU (PReLU / GLN / depthwise) work.
    for r in range(rows):
        x = xacc_ref[r]                                # (L, c_pad) f32, resident

        # conv1x1 (Cin -> H): bf16 MXU operands, f32 accumulate
        c = jnp.dot(x.astype(jnp.bfloat16), w1,
                    preferred_element_type=jnp.float32) + b1

        # PReLU_1 + GLN_1 (f32 VPU/EUP)
        c = jnp.where(c >= 0.0, c, a1 * c)
        c = _gln(c, g1, be1, inv_count, eps)

        # dilated depthwise conv ('same'): zero-padded scratch + dynamic per-block
        # tap offsets from the prefetched SMEM table; center tap stays resident.
        dwpad_ref[r, max_pad:max_pad + L, :] = c
        acc = jnp.zeros((L, h_pad), jnp.float32)
        for k in range(ksize):
            wk = pvec_ref[8 + k:9 + k, :]              # (1, h_pad)
            if (ksize % 2 == 1) and (k == center):
                tap = c                                # zero shift: no scratch read
            else:
                start = starts_ref[blk, k]             # dynamic SMEM scalar
                tap = dwpad_ref[r, pl.ds(start, L), :]
            acc = acc + tap * wk
        c = acc + dwb

        # PReLU_2 + GLN_2
        c = jnp.where(c >= 0.0, c, a2 * c)
        c = _gln(c, g2, be2, inv_count, eps)

        # fused Sc_conv | Output 1x1 convs: one (H, 2*Cin) matmul
        so = jnp.dot(c.astype(jnp.bfloat16), wso,
                     preferred_element_type=jnp.float32) + bso
        skipacc_ref[r] = skipacc_ref[r] + so[:, :c_pad]    # skip path
        xacc_ref[r] = x + so[:, c_pad:]                    # residual path

    # ---- last block: write the accumulated skip connection to HBM -----------
    @pl.when(blk == nblk - 1)
    def _():
        skip_ref[...] = skipacc_ref[...].astype(skip_ref.dtype)


def init_block_params(key, in_ch, hid_ch, ksize):
    """Natural (unpadded) per-block parameters, channels-last convention."""
    ks = jax.random.split(key, 8)
    s1 = 1.0 / (in_ch ** 0.5)
    s2 = 1.0 / (hid_ch ** 0.5)
    sk = 1.0 / (ksize ** 0.5)
    return {
        'w1': jax.random.uniform(ks[0], (in_ch, hid_ch), jnp.float32, -s1, s1),
        'b1': jax.random.uniform(ks[1], (hid_ch,), jnp.float32, -s1, s1),
        'a1': jnp.asarray(0.25, jnp.float32),              # PReLU init
        'g1': jnp.ones((hid_ch,), jnp.float32),             # GLN affine
        'be1': jnp.zeros((hid_ch,), jnp.float32),
        'dww': jax.random.uniform(ks[2], (ksize, hid_ch), jnp.float32, -sk, sk),
        'dwb': jax.random.uniform(ks[3], (hid_ch,), jnp.float32, -sk, sk),
        'a2': jnp.asarray(0.25, jnp.float32),
        'g2': jnp.ones((hid_ch,), jnp.float32),
        'be2': jnp.zeros((hid_ch,), jnp.float32),
        'wsc': jax.random.uniform(ks[4], (hid_ch, in_ch), jnp.float32, -s2, s2),
        'bsc': jax.random.uniform(ks[5], (in_ch,), jnp.float32, -s2, s2),
        'wout': jax.random.uniform(ks[6], (hid_ch, in_ch), jnp.float32, -s2, s2),
        'bout': jax.random.uniform(ks[7], (in_ch,), jnp.float32, -s2, s2),
    }


def pack_params(params_list, dilations, in_ch, hid_ch, ksize, c_pad, h_pad, max_pad):
    """Zero-pad channels to 128 lanes, stack per block, bf16 the MXU weights.

    pvec rows: [b1, g1, be1, a1, dwb, g2, be2, a2, dww_0 .. dww_{ksize-1}].
    starts[blk, k] = max_pad - pad_blk + k * dilation_blk (depthwise tap offsets).
    """
    dc, dh = c_pad - in_ch, h_pad - hid_ch
    w1_l, wso_l, pvec_l, bso_l, starts_l = [], [], [], [], []
    for p, d in zip(params_list, dilations):
        w1_l.append(jnp.pad(p['w1'], ((0, dc), (0, dh))))
        wsc = jnp.pad(p['wsc'], ((0, dh), (0, dc)))
        wout = jnp.pad(p['wout'], ((0, dh), (0, dc)))
        wso_l.append(jnp.concatenate([wsc, wout], axis=1))       # (h_pad, 2*c_pad)
        rows = [
            jnp.pad(p['b1'], (0, dh)),
            jnp.pad(p['g1'], (0, dh)),
            jnp.pad(p['be1'], (0, dh)),
            jnp.pad(jnp.full((hid_ch,), p['a1'], jnp.float32), (0, dh)),
            jnp.pad(p['dwb'], (0, dh)),
            jnp.pad(p['g2'], (0, dh)),
            jnp.pad(p['be2'], (0, dh)),
            jnp.pad(jnp.full((hid_ch,), p['a2'], jnp.float32), (0, dh)),
        ] + [jnp.pad(p['dww'][k], (0, dh)) for k in range(ksize)]
        pvec_l.append(jnp.stack(rows))
        bso_l.append(jnp.concatenate([jnp.pad(p['bsc'], (0, dc)),
                                      jnp.pad(p['bout'], (0, dc))])[None, :])
        pad = d * (ksize - 1) // 2
        starts_l.append([max_pad - pad + k * d for k in range(ksize)])

    packed = dict(
        w1=jnp.stack(w1_l).astype(jnp.bfloat16),        # (nblk, c_pad, h_pad)
        wso=jnp.stack(wso_l).astype(jnp.bfloat16),       # (nblk, h_pad, 2*c_pad)
        pvec=jnp.stack(pvec_l).astype(jnp.float32),      # (nblk, 8+ksize, h_pad)
        bso=jnp.stack(bso_l).astype(jnp.float32),        # (nblk, 1, 2*c_pad)
        starts=jnp.asarray(starts_l, jnp.int32),         # (nblk, ksize)
    )
    # GLN divides by the REAL channel count, which is only valid if every padded
    # hidden lane stays exactly zero through the whole block — guard that here.
    if dh:
        assert float(jnp.max(jnp.abs(packed['w1'][:, :, hid_ch:]))) == 0.0
        assert float(jnp.max(jnp.abs(packed['pvec'][:, :, hid_ch:]))) == 0.0
    return packed


def separation_forward(x_bcl, params_list, dilations, ksize=3, eps=1e-5,
                       rows_per_step=2):
    """x_bcl: [batch, B(channels), L(time)] -> skip-connection sum, same shape."""
    batch, in_ch, L = x_bcl.shape
    hid_ch = params_list[0]['w1'].shape[1]
    nblk = len(params_list)
    c_pad = _round_up(in_ch, LANE)
    h_pad = _round_up(hid_ch, LANE)
    max_pad = max(d * (ksize - 1) // 2 for d in dilations)

    rows = rows_per_step if batch >= rows_per_step else 1
    groups = -(-batch // rows)
    batch_pad = groups * rows

    # channels-last, zero-pad channel lanes to 128, pad batch to full row groups
    x = jnp.transpose(x_bcl, (0, 2, 1)).astype(jnp.float32)
    x = jnp.pad(x, ((0, batch_pad - batch), (0, 0), (0, c_pad - in_ch)))

    pk = pack_params(params_list, dilations, in_ch, hid_ch, ksize,
                     c_pad, h_pad, max_pad)

    kernel = functools.partial(
        _separation_kernel, nblk=int(nblk), ksize=int(ksize), eps=float(eps),
        hid_ch=int(hid_ch), max_pad=int(max_pad), rows=int(rows))

    grid_spec = pltpu.PrefetchScalarGridSpec(
        num_scalar_prefetch=1,                 # depthwise tap-start table (SMEM)
        grid=(groups, nblk),
        in_specs=[
            # activations: one batch group, resident across the block axis
            pl.BlockSpec((rows, L, c_pad), lambda b, k, starts: (b, 0, 0)),
            # per-block weights: streamed (next block's DMA overlaps compute)
            pl.BlockSpec((pl.Squeezed(), c_pad, h_pad),
                         lambda b, k, starts: (k, 0, 0)),
            pl.BlockSpec((pl.Squeezed(), 8 + ksize, h_pad),
                         lambda b, k, starts: (k, 0, 0)),
            pl.BlockSpec((pl.Squeezed(), h_pad, 2 * c_pad),
                         lambda b, k, starts: (k, 0, 0)),
            pl.BlockSpec((pl.Squeezed(), 1, 2 * c_pad),
                         lambda b, k, starts: (k, 0, 0)),
        ],
        out_specs=pl.BlockSpec((rows, L, c_pad), lambda b, k, starts: (b, 0, 0)),
        scratch_shapes=[
            pltpu.VMEM((rows, L, c_pad), jnp.float32),               # x (residual)
            pltpu.VMEM((rows, L, c_pad), jnp.float32),               # skip accum
            pltpu.VMEM((rows, L + 2 * max_pad, h_pad), jnp.float32),  # dwconv pad
        ],
    )

    skip = pl.pallas_call(
        kernel,
        out_shape=jax.ShapeDtypeStruct((batch_pad, L, c_pad), jnp.float32),
        grid_spec=grid_spec,
        compiler_params=pltpu.CompilerParams(
            dimension_semantics=("parallel", "arbitrary"),
            vmem_limit_bytes=_vmem_limit_bytes()),
    )(pk['starts'], x, pk['w1'], pk['pvec'], pk['wso'], pk['bso'])

    return jnp.transpose(skip[:batch, :, :in_ch], (0, 2, 1))


def separation_reference(x_bcl, params_list, dilations, ksize=3, eps=1e-5):
    """Pure-JAX reference (same bf16-operand / f32-accumulate matmul precision)."""
    x = jnp.transpose(x_bcl, (0, 2, 1)).astype(jnp.float32)   # (NB, L, Cin)
    NB, L, _ = x.shape
    skip_total = jnp.zeros_like(x)

    def mm(a, w, b):
        a2 = a.reshape(NB * L, a.shape[-1]).astype(jnp.bfloat16)
        r = jnp.dot(a2, w.astype(jnp.bfloat16), preferred_element_type=jnp.float32)
        return r.reshape(NB, L, w.shape[1]) + b

    def prelu(c, a):
        return jnp.where(c >= 0.0, c, a * c)

    def gln(c, g, b):
        mean = jnp.mean(c, axis=(1, 2), keepdims=True)
        var = jnp.mean((c - mean) ** 2, axis=(1, 2), keepdims=True)
        return g * (c - mean) * lax.rsqrt(var + eps) + b

    for p, d in zip(params_list, dilations):
        pad = d * (ksize - 1) // 2
        H = p['w1'].shape[1]
        c = gln(prelu(mm(x, p['w1'], p['b1']), p['a1']), p['g1'], p['be1'])
        cp = jnp.pad(c, ((0, 0), (pad, pad), (0, 0)))
        acc = jnp.zeros((NB, L, H), jnp.float32)
        for k in range(ksize):
            acc = acc + cp[:, k * d:k * d + L, :] * p['dww'][k][None, None, :]
        c = acc + p['dwb']
        c = gln(prelu(c, p['a2']), p['g2'], p['be2'])
        skip_total = skip_total + mm(c, p['wsc'], p['bsc'])
        x = x + mm(c, p['wout'], p['bout'])
    return jnp.transpose(skip_total, (0, 2, 1))


if __name__ == "__main__":
    # Separation(R=2, X=2, B=16, H=32, P=3, norm='gln', causal=False, skip_con=True)
    R, X, Bch, Hch, Pk = 2, 2, 16, 32, 3
    batch, L = 2, 16

    key = jax.random.PRNGKey(0)
    key, xkey = jax.random.split(key)
    x = jax.random.normal(xkey, (batch, Bch, L), jnp.float32)   # [B, N, L] torch layout

    params_list, dilations = [], []
    for r in range(R):
        for xi in range(X):
            key, sub = jax.random.split(key)
            params_list.append(init_block_params(sub, Bch, Hch, Pk))
            dilations.append(2 ** xi)

    out = separation_forward(x, params_list, dilations, ksize=Pk)
    out = jax.block_until_ready(out)
    ref = jax.block_until_ready(
        separation_reference(x, params_list, dilations, ksize=Pk))

    assert out.shape == (batch, Bch, L)
    assert bool(jnp.all(jnp.isfinite(out)))
    max_err = float(jnp.max(jnp.abs(out - ref)))
    assert max_err < 1e-2, f"kernel/reference mismatch: max abs err {max_err}"
    print("KERNEL_OK")
</pallas_src>

<mosaic_0001>
module attributes {stable_mosaic.version = 11 : i64} {
  func.func @_separation_kernel(%arg0: i32, %arg1: i32, %arg2: memref<4x3xi32, #tpu.memory_space<smem>>, %arg3: memref<2x16x128xf32, #tpu.memory_space<vmem>>, %arg4: memref<1x128x128xbf16, #tpu.memory_space<vmem>>, %arg5: memref<1x11x128xf32, #tpu.memory_space<vmem>>, %arg6: memref<1x128x256xbf16, #tpu.memory_space<vmem>>, %arg7: memref<1x1x256xf32, #tpu.memory_space<vmem>>, %arg8: memref<2x16x128xf32, #tpu.memory_space<vmem>>, %arg9: memref<2x16x128xf32, #tpu.memory_space<vmem>>, %arg10: memref<2x16x128xf32, #tpu.memory_space<vmem>>, %arg11: memref<2x20x128xf32, #tpu.memory_space<vmem>>) attributes {dimension_semantics = [#tpu.dimension_semantics<parallel>, #tpu.dimension_semantics<arbitrary>], iteration_bounds = array<i64: 1, 4>, scalar_prefetch = 1 : i64, scratch_operands = 3 : i64, tpu.core_type = #tpu.core_type<tc>, window_params = [{transform_indices = @transform_0, window_bounds = array<i64: 2, 16, 128>}, {transform_indices = @transform_1, window_bounds = array<i64: 1, 128, 128>}, {transform_indices = @transform_2, window_bounds = array<i64: 1, 11, 128>}, {transform_indices = @transform_3, window_bounds = array<i64: 1, 128, 256>}, {transform_indices = @transform_4, window_bounds = array<i64: 1, 1, 256>}, {transform_indices = @transform_5, window_bounds = array<i64: 2, 16, 128>}]} {
    %c0_i32 = arith.constant 0 : i32
    %0 = arith.cmpi eq, %arg1, %c0_i32 : i32
    %1 = arith.extui %0 : i1 to i32
    %c0_i32_0 = arith.constant 0 : i32
    %2 = arith.cmpi ne, %1, %c0_i32_0 : i32
    scf.if %2 {
      %c0_117 = arith.constant 0 : index
      %c0_118 = arith.constant 0 : index
      %c0_119 = arith.constant 0 : index
      %278 = vector.load %arg3[%c0_117, %c0_118, %c0_119] : memref<2x16x128xf32, #tpu.memory_space<vmem>>, vector<2x16x128xf32>
      %c0_120 = arith.constant 0 : index
      %c0_121 = arith.constant 0 : index
      %c0_122 = arith.constant 0 : index
      %279 = vector.load %arg9[%c0_120, %c0_121, %c0_122] : memref<2x16x128xf32, #tpu.memory_space<vmem>>, vector<2x16x128xf32>
      tpu.vector_store %arg9[%c0_120, %c0_121, %c0_122], %278 {strides = array<i32>} : memref<2x16x128xf32, #tpu.memory_space<vmem>>, vector<2x16x128xf32>,
      %cst_123 = arith.constant 0.000000e+00 : f32
      %280 = vector.broadcast %cst_123 : f32 to vector<2x16x128xf32>
      %c0_124 = arith.constant 0 : index
      %c0_125 = arith.constant 0 : index
      %c0_126 = arith.constant 0 : index
      %281 = vector.load %arg10[%c0_124, %c0_125, %c0_126] : memref<2x16x128xf32, #tpu.memory_space<vmem>>, vector<2x16x128xf32>
      tpu.vector_store %arg10[%c0_124, %c0_125, %c0_126], %280 {strides = array<i32>} : memref<2x16x128xf32, #tpu.memory_space<vmem>>, vector<2x16x128xf32>,
      %cst_127 = arith.constant 0.000000e+00 : f32
      %282 = vector.broadcast %cst_127 : f32 to vector<2x2x128xf32>
      %c0_128 = arith.constant 0 : index
      %c0_129 = arith.constant 0 : index
      %c0_130 = arith.constant 0 : index
      %283 = vector.load %arg11[%c0_128, %c0_129, %c0_130] : memref<2x20x128xf32, #tpu.memory_space<vmem>>, vector<2x2x128xf32>
      tpu.vector_store %arg11[%c0_128, %c0_129, %c0_130], %282 {strides = array<i32>} : memref<2x20x128xf32, #tpu.memory_space<vmem>>, vector<2x2x128xf32>,
      %c0_131 = arith.constant 0 : index
      %c18 = arith.constant 18 : index
      %c0_132 = arith.constant 0 : index
      %284 = vector.load %arg11[%c0_131, %c18, %c0_132] : memref<2x20x128xf32, #tpu.memory_space<vmem>>, vector<2x2x128xf32>
      tpu.vector_store %arg11[%c0_131, %c18, %c0_132], %282 {strides = array<i32>} : memref<2x20x128xf32, #tpu.memory_space<vmem>>, vector<2x2x128xf32>,
    } else {
    }
    %c0 = arith.constant 0 : index
    %c0_1 = arith.constant 0 : index
    %c0_2 = arith.constant 0 : index
    %3 = vector.load %arg4[%c0, %c0_1, %c0_2] : memref<1x128x128xbf16, #tpu.memory_space<vmem>>, vector<1x128x128xbf16>
    %4 = vector.shape_cast %3 : vector<1x128x128xbf16> to vector<128x128xbf16>
    %c0_3 = arith.constant 0 : index
    %c0_4 = arith.constant 0 : index
    %c0_5 = arith.constant 0 : index
    %5 = vector.load %arg6[%c0_3, %c0_4, %c0_5] : memref<1x128x256xbf16, #tpu.memory_space<vmem>>, vector<1x128x256xbf16>
    %6 = vector.shape_cast %5 : vector<1x128x256xbf16> to vector<128x256xbf16>
    %c0_6 = arith.constant 0 : index
    %c0_7 = arith.constant 0 : index
    %c0_8 = arith.constant 0 : index
    %7 = vector.load %arg7[%c0_6, %c0_7, %c0_8] : memref<1x1x256xf32, #tpu.memory_space<vmem>>, vector<1x1x256xf32>
    %8 = vector.shape_cast %7 : vector<1x1x256xf32> to vector<1x256xf32>
    %c0_9 = arith.constant 0 : index
    %c0_10 = arith.constant 0 : index
    %c0_11 = arith.constant 0 : index
    %9 = vector.load %arg5[%c0_9, %c0_10, %c0_11] : memref<1x11x128xf32, #tpu.memory_space<vmem>>, vector<1x1x128xf32>
    %10 = vector.shape_cast %9 : vector<1x1x128xf32> to vector<1x128xf32>
    %c0_12 = arith.constant 0 : index
    %c1 = arith.constant 1 : index
    %c0_13 = arith.constant 0 : index
    %11 = vector.load %arg5[%c0_12, %c1, %c0_13] : memref<1x11x128xf32, #tpu.memory_space<vmem>>, vector<1x1x128xf32>
    %12 = vector.shape_cast %11 : vector<1x1x128xf32> to vector<1x128xf32>
    %c0_14 = arith.constant 0 : index
    %c2 = arith.constant 2 : index
    %c0_15 = arith.constant 0 : index
    %13 = vector.load %arg5[%c0_14, %c2, %c0_15] : memref<1x11x128xf32, #tpu.memory_space<vmem>>, vector<1x1x128xf32>
    %14 = vector.shape_cast %13 : vector<1x1x128xf32> to vector<1x128xf32>
    %c0_16 = arith.constant 0 : index
    %c3 = arith.constant 3 : index
    %c0_17 = arith.constant 0 : index
    %15 = vector.load %arg5[%c0_16, %c3, %c0_17] : memref<1x11x128xf32, #tpu.memory_space<vmem>>, vector<1x1x128xf32>
    %16 = vector.shape_cast %15 : vector<1x1x128xf32> to vector<1x128xf32>
    %c0_18 = arith.constant 0 : index
    %c4 = arith.constant 4 : index
    %c0_19 = arith.constant 0 : index
    %17 = vector.load %arg5[%c0_18, %c4, %c0_19] : memref<1x11x128xf32, #tpu.memory_space<vmem>>, vector<1x1x128xf32>
    %18 = vector.shape_cast %17 : vector<1x1x128xf32> to vector<1x128xf32>
    %c0_20 = arith.constant 0 : index
    %c5 = arith.constant 5 : index
    %c0_21 = arith.constant 0 : index
    %19 = vector.load %arg5[%c0_20, %c5, %c0_21] : memref<1x11x128xf32, #tpu.memory_space<vmem>>, vector<1x1x128xf32>
    %20 = vector.shape_cast %19 : vector<1x1x128xf32> to vector<1x128xf32>
    %c0_22 = arith.constant 0 : index
    %c6 = arith.constant 6 : index
    %c0_23 = arith.constant 0 : index
    %21 = vector.load %arg5[%c0_22, %c6, %c0_23] : memref<1x11x128xf32, #tpu.memory_space<vmem>>, vector<1x1x128xf32>
    %22 = vector.shape_cast %21 : vector<1x1x128xf32> to vector<1x128xf32>
    %c0_24 = arith.constant 0 : index
    %c7 = arith.constant 7 : index
    %c0_25 = arith.constant 0 : index
    %23 = vector.load %arg5[%c0_24, %c7, %c0_25] : memref<1x11x128xf32, #tpu.memory_space<vmem>>, vector<1x1x128xf32>
    %24 = vector.shape_cast %23 : vector<1x1x128xf32> to vector<1x128xf32>
    %c0_26 = arith.constant 0 : index
    %c0_27 = arith.constant 0 : index
    %c0_28 = arith.constant 0 : index
    %25 = vector.load %arg9[%c0_26, %c0_27, %c0_28] : memref<2x16x128xf32, #tpu.memory_space<vmem>>, vector<1x16x128xf32>
    %26 = vector.shape_cast %25 : vector<1x16x128xf32> to vector<16x128xf32>
    %27 = arith.truncf %26 : vector<16x128xf32> to vector<16x128xbf16>
    %cst = arith.constant dense<0.000000e+00> : vector<16x128xf32>
    %28 = tpu.matmul %27, %4, %cst {dimension_numbers = #tpu.dot_dimension_numbers<[1], [0], [0], [1], [0, 0, 1, 1], [], []>} : vector<16x128xbf16>, vector<128x128xbf16>, vector<16x128xf32> -> vector<16x128xf32>
    %29 = vector.broadcast %10 : vector<1x128xf32> to vector<16x128xf32>
    %30 = arith.addf %28, %29 : vector<16x128xf32>
    %cst_29 = arith.constant 0.000000e+00 : f32
    %31 = vector.broadcast %cst_29 : f32 to vector<16x128xf32>
    %32 = arith.cmpf oge, %30, %31 : vector<16x128xf32>
    %33 = vector.broadcast %16 : vector<1x128xf32> to vector<16x128xf32>
    %34 = arith.mulf %33, %30 : vector<16x128xf32>
    %35 = arith.select %32, %30, %34 : vector<16x128xi1>, vector<16x128xf32>
    %36 = vector.shape_cast %35 : vector<16x128xf32> to vector<1x16x128xf32>
    %cst_30 = arith.constant dense<0.000000e+00> : vector<1xf32>
    %37 = vector.multi_reduction <add>, %36, %cst_30 [1, 2] : vector<1x16x128xf32> to vector<1xf32>
    %38 = vector.shape_cast %37 : vector<1xf32> to vector<1x1x1xf32>
    %39 = vector.extract %38[0, 0, 0] : f32 from vector<1x1x1xf32>
    %40 = vector.broadcast %39 : f32 to vector<1x1xf32>
    %41 = arith.mulf %35, %35 : vector<16x128xf32>
    %42 = vector.shape_cast %41 : vector<16x128xf32> to vector<1x16x128xf32>
    %cst_31 = arith.constant dense<0.000000e+00> : vector<1xf32>
    %43 = vector.multi_reduction <add>, %42, %cst_31 [1, 2] : vector<1x16x128xf32> to vector<1xf32>
    %44 = vector.shape_cast %43 : vector<1xf32> to vector<1x1x1xf32>
    %45 = vector.extract %44[0, 0, 0] : f32 from vector<1x1x1xf32>
    %46 = vector.broadcast %45 : f32 to vector<1x1xf32>
    %cst_32 = arith.constant 0.001953125 : f32
    %47 = vector.broadcast %cst_32 : f32 to vector<1x1xf32>
    %48 = arith.mulf %40, %47 : vector<1x1xf32>
    %cst_33 = arith.constant 0.001953125 : f32
    %49 = vector.broadcast %cst_33 : f32 to vector<1x1xf32>
    %50 = arith.mulf %46, %49 : vector<1x1xf32>
    %51 = arith.mulf %48, %48 : vector<1x1xf32>
    %52 = arith.subf %50, %51 : vector<1x1xf32>
    %cst_34 = arith.constant 0.000000e+00 : f32
    %53 = vector.broadcast %cst_34 : f32 to vector<1x1xf32>
    %54 = arith.maximumf %52, %53 : vector<1x1xf32>
    %cst_35 = arith.constant 9.99999974E-6 : f32
    %55 = vector.broadcast %cst_35 : f32 to vector<1x1xf32>
    %56 = arith.addf %54, %55 : vector<1x1xf32>
    %57 = math.rsqrt %56 : vector<1x1xf32>
    %58 = vector.broadcast %57 : vector<1x1xf32> to vector<1x128xf32>
    %59 = arith.mulf %12, %58 : vector<1x128xf32>
    %60 = vector.broadcast %48 : vector<1x1xf32> to vector<1x128xf32>
    %61 = arith.mulf %60, %59 : vector<1x128xf32>
    %62 = arith.subf %14, %61 : vector<1x128xf32>
    %63 = vector.broadcast %59 : vector<1x128xf32> to vector<16x128xf32>
    %64 = arith.mulf %35, %63 : vector<16x128xf32>
    %65 = vector.broadcast %62 : vector<1x128xf32> to vector<16x128xf32>
    %66 = arith.addf %64, %65 : vector<16x128xf32>
    %c0_36 = arith.constant 0 : index
    %c2_37 = arith.constant 2 : index
    %c0_38 = arith.constant 0 : index
    %67 = vector.load %arg11[%c0_36, %c2_37, %c0_38] : memref<2x20x128xf32, #tpu.memory_space<vmem>>, vector<1x16x128xf32>
    %68 = vector.shape_cast %67 : vector<1x16x128xf32> to vector<16x128xf32>
    %69 = vector.shape_cast %66 : vector<16x128xf32> to vector<1x16x128xf32>
    tpu.vector_store %arg11[%c0_36, %c2_37, %c0_38], %69 {strides = array<i32>} : memref<2x20x128xf32, #tpu.memory_space<vmem>>, vector<1x16x128xf32>,
    %cst_39 = arith.constant 0.000000e+00 : f32
    %70 = vector.broadcast %cst_39 : f32 to vector<16x128xf32>
    %c0_40 = arith.constant 0 : index
    %c8 = arith.constant 8 : index
    %c0_41 = arith.constant 0 : index
    %71 = vector.load %arg5[%c0_40, %c8, %c0_41] : memref<1x11x128xf32, #tpu.memory_space<vmem>>, vector<1x1x128xf32>
    %72 = vector.shape_cast %71 : vector<1x1x128xf32> to vector<1x128xf32>
    %73 = arith.index_cast %arg1 : i32 to index
    %c0_42 = arith.constant 0 : index
    %74 = memref.load %arg2[%73, %c0_42] : memref<4x3xi32, #tpu.memory_space<smem>>
    %c0_43 = arith.constant 0 : index
    %75 = arith.index_cast %74 : i32 to index
    %c0_44 = arith.constant 0 : index
    %76 = vector.load %arg11[%c0_43, %75, %c0_44] : memref<2x20x128xf32, #tpu.memory_space<vmem>>, vector<1x16x128xf32>
    %77 = vector.shape_cast %76 : vector<1x16x128xf32> to vector<16x128xf32>
    %78 = vector.broadcast %72 : vector<1x128xf32> to vector<16x128xf32>
    %79 = arith.mulf %77, %78 : vector<16x128xf32>
    %80 = arith.addf %70, %79 : vector<16x128xf32>
    %c0_45 = arith.constant 0 : index
    %c9 = arith.constant 9 : index
    %c0_46 = arith.constant 0 : index
    %81 = vector.load %arg5[%c0_45, %c9, %c0_46] : memref<1x11x128xf32, #tpu.memory_space<vmem>>, vector<1x1x128xf32>
    %82 = vector.shape_cast %81 : vector<1x1x128xf32> to vector<1x128xf32>
    %83 = vector.broadcast %82 : vector<1x128xf32> to vector<16x128xf32>
    %84 = arith.mulf %66, %83 : vector<16x128xf32>
    %85 = arith.addf %80, %84 : vector<16x128xf32>
    %c0_47 = arith.constant 0 : index
    %c10 = arith.constant 10 : index
    %c0_48 = arith.constant 0 : index
    %86 = vector.load %arg5[%c0_47, %c10, %c0_48] : memref<1x11x128xf32, #tpu.memory_space<vmem>>, vector<1x1x128xf32>
    %87 = vector.shape_cast %86 : vector<1x1x128xf32> to vector<1x128xf32>
    %88 = arith.index_cast %arg1 : i32 to index
    %c2_49 = arith.constant 2 : index
    %89 = memref.load %arg2[%88, %c2_49] : memref<4x3xi32, #tpu.memory_space<smem>>
    %c0_50 = arith.constant 0 : index
    %90 = arith.index_cast %89 : i32 to index
    %c0_51 = arith.constant 0 : index
    %91 = vector.load %arg11[%c0_50, %90, %c0_51] : memref<2x20x128xf32, #tpu.memory_space<vmem>>, vector<1x16x128xf32>
    %92 = vector.shape_cast %91 : vector<1x16x128xf32> to vector<16x128xf32>
    %93 = vector.broadcast %87 : vector<1x128xf32> to vector<16x128xf32>
    %94 = arith.mulf %92, %93 : vector<16x128xf32>
    %95 = arith.addf %85, %94 : vector<16x128xf32>
    %96 = vector.broadcast %18 : vector<1x128xf32> to vector<16x128xf32>
    %97 = arith.addf %95, %96 : vector<16x128xf32>
    %cst_52 = arith.constant 0.000000e+00 : f32
    %98 = vector.broadcast %cst_52 : f32 to vector<16x128xf32>
    %99 = arith.cmpf oge, %97, %98 : vector<16x128xf32>
    %100 = vector.broadcast %24 : vector<1x128xf32> to vector<16x128xf32>
    %101 = arith.mulf %100, %97 : vector<16x128xf32>
    %102 = arith.select %99, %97, %101 : vector<16x128xi1>, vector<16x128xf32>
    %103 = vector.shape_cast %102 : vector<16x128xf32> to vector<1x16x128xf32>
    %cst_53 = arith.constant dense<0.000000e+00> : vector<1xf32>
    %104 = vector.multi_reduction <add>, %103, %cst_53 [1, 2] : vector<1x16x128xf32> to vector<1xf32>
    %105 = vector.shape_cast %104 : vector<1xf32> to vector<1x1x1xf32>
    %106 = vector.extract %105[0, 0, 0] : f32 from vector<1x1x1xf32>
    %107 = vector.broadcast %106 : f32 to vector<1x1xf32>
    %108 = arith.mulf %102, %102 : vector<16x128xf32>
    %109 = vector.shape_cast %108 : vector<16x128xf32> to vector<1x16x128xf32>
    %cst_54 = arith.constant dense<0.000000e+00> : vector<1xf32>
    %110 = vector.multi_reduction <add>, %109, %cst_54 [1, 2] : vector<1x16x128xf32> to vector<1xf32>
    %111 = vector.shape_cast %110 : vector<1xf32> to vector<1x1x1xf32>
    %112 = vector.extract %111[0, 0, 0] : f32 from vector<1x1x1xf32>
    %113 = vector.broadcast %112 : f32 to vector<1x1xf32>
    %cst_55 = arith.constant 0.001953125 : f32
    %114 = vector.broadcast %cst_55 : f32 to vector<1x1xf32>
    %115 = arith.mulf %107, %114 : vector<1x1xf32>
    %cst_56 = arith.constant 0.001953125 : f32
    %116 = vector.broadcast %cst_56 : f32 to vector<1x1xf32>
    %117 = arith.mulf %113, %116 : vector<1x1xf32>
    %118 = arith.mulf %115, %115 : vector<1x1xf32>
    %119 = arith.subf %117, %118 : vector<1x1xf32>
    %cst_57 = arith.constant 0.000000e+00 : f32
    %120 = vector.broadcast %cst_57 : f32 to vector<1x1xf32>
    %121 = arith.maximumf %119, %120 : vector<1x1xf32>
    %cst_58 = arith.constant 9.99999974E-6 : f32
    %122 = vector.broadcast %cst_58 : f32 to vector<1x1xf32>
    %123 = arith.addf %121, %122 : vector<1x1xf32>
    %124 = math.rsqrt %123 : vector<1x1xf32>
    %125 = vector.broadcast %124 : vector<1x1xf32> to vector<1x128xf32>
    %126 = arith.mulf %20, %125 : vector<1x128xf32>
    %127 = vector.broadcast %115 : vector<1x1xf32> to vector<1x128xf32>
    %128 = arith.mulf %127, %126 : vector<1x128xf32>
    %129 = arith.subf %22, %128 : vector<1x128xf32>
    %130 = vector.broadcast %126 : vector<1x128xf32> to vector<16x128xf32>
    %131 = arith.mulf %102, %130 : vector<16x128xf32>
    %132 = vector.broadcast %129 : vector<1x128xf32> to vector<16x128xf32>
    %133 = arith.addf %131, %132 : vector<16x128xf32>
    %134 = arith.truncf %133 : vector<16x128xf32> to vector<16x128xbf16>
    %cst_59 = arith.constant dense<0.000000e+00> : vector<16x256xf32>
    %135 = tpu.matmul %134, %6, %cst_59 {dimension_numbers = #tpu.dot_dimension_numbers<[1], [0], [0], [1], [0, 0, 1, 1], [], []>} : vector<16x128xbf16>, vector<128x256xbf16>, vector<16x256xf32> -> vector<16x256xf32>
    %136 = vector.broadcast %8 : vector<1x256xf32> to vector<16x256xf32>
    %137 = arith.addf %135, %136 : vector<16x256xf32>
    %c0_60 = arith.constant 0 : index
    %c0_61 = arith.constant 0 : index
    %c0_62 = arith.constant 0 : index
    %138 = vector.load %arg10[%c0_60, %c0_61, %c0_62] : memref<2x16x128xf32, #tpu.memory_space<vmem>>, vector<1x16x128xf32>
    %139 = vector.shape_cast %138 : vector<1x16x128xf32> to vector<16x128xf32>
    %140 = vector.extract_strided_slice %137 {offsets = [0, 0], sizes = [16, 128], strides = [1, 1]} : vector<16x256xf32> to vector<16x128xf32>
    %141 = arith.addf %139, %140 : vector<16x128xf32>
    %c0_63 = arith.constant 0 : index
    %c0_64 = arith.constant 0 : index
    %c0_65 = arith.constant 0 : index
    %142 = vector.load %arg10[%c0_63, %c0_64, %c0_65] : memref<2x16x128xf32, #tpu.memory_space<vmem>>, vector<1x16x128xf32>
    %143 = vector.shape_cast %142 : vector<1x16x128xf32> to vector<16x128xf32>
    %144 = vector.shape_cast %141 : vector<16x128xf32> to vector<1x16x128xf32>
    tpu.vector_store %arg10[%c0_63, %c0_64, %c0_65], %144 {strides = array<i32>} : memref<2x16x128xf32, #tpu.memory_space<vmem>>, vector<1x16x128xf32>,
    %145 = vector.extract_strided_slice %137 {offsets = [0, 128], sizes = [16, 128], strides = [1, 1]} : vector<16x256xf32> to vector<16x128xf32>
    %146 = arith.addf %26, %145 : vector<16x128xf32>
    %c0_66 = arith.constant 0 : index
    %c0_67 = arith.constant 0 : index
    %c0_68 = arith.constant 0 : index
    %147 = vector.load %arg9[%c0_66, %c0_67, %c0_68] : memref<2x16x128xf32, #tpu.memory_space<vmem>>, vector<1x16x128xf32>
    %148 = vector.shape_cast %147 : vector<1x16x128xf32> to vector<16x128xf32>
    %149 = vector.shape_cast %146 : vector<16x128xf32> to vector<1x16x128xf32>
    tpu.vector_store %arg9[%c0_66, %c0_67, %c0_68], %149 {strides = array<i32>} : memref<2x16x128xf32, #tpu.memory_space<vmem>>, vector<1x16x128xf32>,
    %c1_69 = arith.constant 1 : index
    %c0_70 = arith.constant 0 : index
    %c0_71 = arith.constant 0 : index
    %150 = vector.load %arg9[%c1_69, %c0_70, %c0_71] : memref<2x16x128xf32, #tpu.memory_space<vmem>>, vector<1x16x128xf32>
    %151 = vector.shape_cast %150 : vector<1x16x128xf32> to vector<16x128xf32>
    %152 = arith.truncf %151 : vector<16x128xf32> to vector<16x128xbf16>
    %cst_72 = arith.constant dense<0.000000e+00> : vector<16x128xf32>
    %153 = tpu.matmul %152, %4, %cst_72 {dimension_numbers = #tpu.dot_dimension_numbers<[1], [0], [0], [1], [0, 0, 1, 1], [], []>} : vector<16x128xbf16>, vector<128x128xbf16>, vector<16x128xf32> -> vector<16x128xf32>
    %154 = vector.broadcast %10 : vector<1x128xf32> to vector<16x128xf32>
    %155 = arith.addf %153, %154 : vector<16x128xf32>
    %cst_73 = arith.constant 0.000000e+00 : f32
    %156 = vector.broadcast %cst_73 : f32 to vector<16x128xf32>
    %157 = arith.cmpf oge, %155, %156 : vector<16x128xf32>
    %158 = vector.broadcast %16 : vector<1x128xf32> to vector<16x128xf32>
    %159 = arith.mulf %158, %155 : vector<16x128xf32>
    %160 = arith.select %157, %155, %159 : vector<16x128xi1>, vector<16x128xf32>
    %161 = vector.shape_cast %160 : vector<16x128xf32> to vector<1x16x128xf32>
    %cst_74 = arith.constant dense<0.000000e+00> : vector<1xf32>
    %162 = vector.multi_reduction <add>, %161, %cst_74 [1, 2] : vector<1x16x128xf32> to vector<1xf32>
    %163 = vector.shape_cast %162 : vector<1xf32> to vector<1x1x1xf32>
    %164 = vector.extract %163[0, 0, 0] : f32 from vector<1x1x1xf32>
    %165 = vector.broadcast %164 : f32 to vector<1x1xf32>
    %166 = arith.mulf %160, %160 : vector<16x128xf32>
    %167 = vector.shape_cast %166 : vector<16x128xf32> to vector<1x16x128xf32>
    %cst_75 = arith.constant dense<0.000000e+00> : vector<1xf32>
    %168 = vector.multi_reduction <add>, %167, %cst_75 [1, 2] : vector<1x16x128xf32> to vector<1xf32>
    %169 = vector.shape_cast %168 : vector<1xf32> to vector<1x1x1xf32>
    %170 = vector.extract %169[0, 0, 0] : f32 from vector<1x1x1xf32>
    %171 = vector.broadcast %170 : f32 to vector<1x1xf32>
    %cst_76 = arith.constant 0.001953125 : f32
    %172 = vector.broadcast %cst_76 : f32 to vector<1x1xf32>
    %173 = arith.mulf %165, %172 : vector<1x1xf32>
    %cst_77 = arith.constant 0.001953125 : f32
    %174 = vector.broadcast %cst_77 : f32 to vector<1x1xf32>
    %175 = arith.mulf %171, %174 : vector<1x1xf32>
    %176 = arith.mulf %173, %173 : vector<1x1xf32>
    %177 = arith.subf %175, %176 : vector<1x1xf32>
    %cst_78 = arith.constant 0.000000e+00 : f32
    %178 = vector.broadcast %cst_78 : f32 to vector<1x1xf32>
    %179 = arith.maximumf %177, %178 : vector<1x1xf32>
    %cst_79 = arith.constant 9.99999974E-6 : f32
    %180 = vector.broadcast %cst_79 : f32 to vector<1x1xf32>
    %181 = arith.addf %179, %180 : vector<1x1xf32>
    %182 = math.rsqrt %181 : vector<1x1xf32>
    %183 = vector.broadcast %182 : vector<1x1xf32> to vector<1x128xf32>
    %184 = arith.mulf %12, %183 : vector<1x128xf32>
    %185 = vector.broadcast %173 : vector<1x1xf32> to vector<1x128xf32>
    %186 = arith.mulf %185, %184 : vector<1x128xf32>
    %187 = arith.subf %14, %186 : vector<1x128xf32>
    %188 = vector.broadcast %184 : vector<1x128xf32> to vector<16x128xf32>
    %189 = arith.mulf %160, %188 : vector<16x128xf32>
    %190 = vector.broadcast %187 : vector<1x128xf32> to vector<16x128xf32>
    %191 = arith.addf %189, %190 : vector<16x128xf32>
    %c1_80 = arith.constant 1 : index
    %c2_81 = arith.constant 2 : index
    %c0_82 = arith.constant 0 : index
    %192 = vector.load %arg11[%c1_80, %c2_81, %c0_82] : memref<2x20x128xf32, #tpu.memory_space<vmem>>, vector<1x16x128xf32>
    %193 = vector.shape_cast %192 : vector<1x16x128xf32> to vector<16x128xf32>
    %194 = vector.shape_cast %191 : vector<16x128xf32> to vector<1x16x128xf32>
    tpu.vector_store %arg11[%c1_80, %c2_81, %c0_82], %194 {strides = array<i32>} : memref<2x20x128xf32, #tpu.memory_space<vmem>>, vector<1x16x128xf32>,
    %cst_83 = arith.constant 0.000000e+00 : f32
    %195 = vector.broadcast %cst_83 : f32 to vector<16x128xf32>
    %c0_84 = arith.constant 0 : index
    %c8_85 = arith.constant 8 : index
    %c0_86 = arith.constant 0 : index
    %196 = vector.load %arg5[%c0_84, %c8_85, %c0_86] : memref<1x11x128xf32, #tpu.memory_space<vmem>>, vector<1x1x128xf32>
    %197 = vector.shape_cast %196 : vector<1x1x128xf32> to vector<1x128xf32>
    %198 = arith.index_cast %arg1 : i32 to index
    %c0_87 = arith.constant 0 : index
    %199 = memref.load %arg2[%198, %c0_87] : memref<4x3xi32, #tpu.memory_space<smem>>
    %c1_88 = arith.constant 1 : index
    %200 = arith.index_cast %199 : i32 to index
    %c0_89 = arith.constant 0 : index
    %201 = vector.load %arg11[%c1_88, %200, %c0_89] : memref<2x20x128xf32, #tpu.memory_space<vmem>>, vector<1x16x128xf32>
    %202 = vector.shape_cast %201 : vector<1x16x128xf32> to vector<16x128xf32>
    %203 = vector.broadcast %197 : vector<1x128xf32> to vector<16x128xf32>
    %204 = arith.mulf %202, %203 : vector<16x128xf32>
    %205 = arith.addf %195, %204 : vector<16x128xf32>
    %c0_90 = arith.constant 0 : index
    %c9_91 = arith.constant 9 : index
    %c0_92 = arith.constant 0 : index
    %206 = vector.load %arg5[%c0_90, %c9_91, %c0_92] : memref<1x11x128xf32, #tpu.memory_space<vmem>>, vector<1x1x128xf32>
    %207 = vector.shape_cast %206 : vector<1x1x128xf32> to vector<1x128xf32>
    %208 = vector.broadcast %207 : vector<1x128xf32> to vector<16x128xf32>
    %209 = arith.mulf %191, %208 : vector<16x128xf32>
    %210 = arith.addf %205, %209 : vector<16x128xf32>
    %c0_93 = arith.constant 0 : index
    %c10_94 = arith.constant 10 : index
    %c0_95 = arith.constant 0 : index
    %211 = vector.load %arg5[%c0_93, %c10_94, %c0_95] : memref<1x11x128xf32, #tpu.memory_space<vmem>>, vector<1x1x128xf32>
    %212 = vector.shape_cast %211 : vector<1x1x128xf32> to vector<1x128xf32>
    %213 = arith.index_cast %arg1 : i32 to index
    %c2_96 = arith.constant 2 : index
    %214 = memref.load %arg2[%213, %c2_96] : memref<4x3xi32, #tpu.memory_space<smem>>
    %c1_97 = arith.constant 1 : index
    %215 = arith.index_cast %214 : i32 to index
    %c0_98 = arith.constant 0 : index
    %216 = vector.load %arg11[%c1_97, %215, %c0_98] : memref<2x20x128xf32, #tpu.memory_space<vmem>>, vector<1x16x128xf32>
    %217 = vector.shape_cast %216 : vector<1x16x128xf32> to vector<16x128xf32>
    %218 = vector.broadcast %212 : vector<1x128xf32> to vector<16x128xf32>
    %219 = arith.mulf %217, %218 : vector<16x128xf32>
    %220 = arith.addf %210, %219 : vector<16x128xf32>
    %221 = vector.broadcast %18 : vector<1x128xf32> to vector<16x128xf32>
    %222 = arith.addf %220, %221 : vector<16x128xf32>
    %cst_99 = arith.constant 0.000000e+00 : f32
    %223 = vector.broadcast %cst_99 : f32 to vector<16x128xf32>
    %224 = arith.cmpf oge, %222, %223 : vector<16x128xf32>
    %225 = vector.broadcast %24 : vector<1x128xf32> to vector<16x128xf32>
    %226 = arith.mulf %225, %222 : vector<16x128xf32>
    %227 = arith.select %224, %222, %226 : vector<16x128xi1>, vector<16x128xf32>
    %228 = vector.shape_cast %227 : vector<16x128xf32> to vector<1x16x128xf32>
    %cst_100 = arith.constant dense<0.000000e+00> : vector<1xf32>
    %229 = vector.multi_reduction <add>, %228, %cst_100 [1, 2] : vector<1x16x128xf32> to vector<1xf32>
    %230 = vector.shape_cast %229 : vector<1xf32> to vector<1x1x1xf32>
    %231 = vector.extract %230[0, 0, 0] : f32 from vector<1x1x1xf32>
    %232 = vector.broadcast %231 : f32 to vector<1x1xf32>
    %233 = arith.mulf %227, %227 : vector<16x128xf32>
    %234 = vector.shape_cast %233 : vector<16x128xf32> to vector<1x16x128xf32>
    %cst_101 = arith.constant dense<0.000000e+00> : vector<1xf32>
    %235 = vector.multi_reduction <add>, %234, %cst_101 [1, 2] : vector<1x16x128xf32> to vector<1xf32>
    %236 = vector.shape_cast %235 : vector<1xf32> to vector<1x1x1xf32>
    %237 = vector.extract %236[0, 0, 0] : f32 from vector<1x1x1xf32>
    %238 = vector.broadcast %237 : f32 to vector<1x1xf32>
    %cst_102 = arith.constant 0.001953125 : f32
    %239 = vector.broadcast %cst_102 : f32 to vector<1x1xf32>
    %240 = arith.mulf %232, %239 : vector<1x1xf32>
    %cst_103 = arith.constant 0.001953125 : f32
    %241 = vector.broadcast %cst_103 : f32 to vector<1x1xf32>
    %242 = arith.mulf %238, %241 : vector<1x1xf32>
    %243 = arith.mulf %240, %240 : vector<1x1xf32>
    %244 = arith.subf %242, %243 : vector<1x1xf32>
    %cst_104 = arith.constant 0.000000e+00 : f32
    %245 = vector.broadcast %cst_104 : f32 to vector<1x1xf32>
    %246 = arith.maximumf %244, %245 : vector<1x1xf32>
    %cst_105 = arith.constant 9.99999974E-6 : f32
    %247 = vector.broadcast %cst_105 : f32 to vector<1x1xf32>
    %248 = arith.addf %246, %247 : vector<1x1xf32>
    %249 = math.rsqrt %248 : vector<1x1xf32>
    %250 = vector.broadcast %249 : vector<1x1xf32> to vector<1x128xf32>
    %251 = arith.mulf %20, %250 : vector<1x128xf32>
    %252 = vector.broadcast %240 : vector<1x1xf32> to vector<1x128xf32>
    %253 = arith.mulf %252, %251 : vector<1x128xf32>
    %254 = arith.subf %22, %253 : vector<1x128xf32>
    %255 = vector.broadcast %251 : vector<1x128xf32> to vector<16x128xf32>
    %256 = arith.mulf %227, %255 : vector<16x128xf32>
    %257 = vector.broadcast %254 : vector<1x128xf32> to vector<16x128xf32>
    %258 = arith.addf %256, %257 : vector<16x128xf32>
    %259 = arith.truncf %258 : vector<16x128xf32> to vector<16x128xbf16>
    %cst_106 = arith.constant dense<0.000000e+00> : vector<16x256xf32>
    %260 = tpu.matmul %259, %6, %cst_106 {dimension_numbers = #tpu.dot_dimension_numbers<[1], [0], [0], [1], [0, 0, 1, 1], [], []>} : vector<16x128xbf16>, vector<128x256xbf16>, vector<16x256xf32> -> vector<16x256xf32>
    %261 = vector.broadcast %8 : vector<1x256xf32> to vector<16x256xf32>
    %262 = arith.addf %260, %261 : vector<16x256xf32>
    %c1_107 = arith.constant 1 : index
    %c0_108 = arith.constant 0 : index
    %c0_109 = arith.constant 0 : index
    %263 = vector.load %arg10[%c1_107, %c0_108, %c0_109] : memref<2x16x128xf32, #tpu.memory_space<vmem>>, vector<1x16x128xf32>
    %264 = vector.shape_cast %263 : vector<1x16x128xf32> to vector<16x128xf32>
    %265 = vector.extract_strided_slice %262 {offsets = [0, 0], sizes = [16, 128], strides = [1, 1]} : vector<16x256xf32> to vector<16x128xf32>
    %266 = arith.addf %264, %265 : vector<16x128xf32>
    %c1_110 = arith.constant 1 : index
    %c0_111 = arith.constant 0 : index
    %c0_112 = arith.constant 0 : index
    %267 = vector.load %arg10[%c1_110, %c0_111, %c0_112] : memref<2x16x128xf32, #tpu.memory_space<vmem>>, vector<1x16x128xf32>
    %268 = vector.shape_cast %267 : vector<1x16x128xf32> to vector<16x128xf32>
    %269 = vector.shape_cast %266 : vector<16x128xf32> to vector<1x16x128xf32>
    tpu.vector_store %arg10[%c1_110, %c0_111, %c0_112], %269 {strides = array<i32>} : memref<2x16x128xf32, #tpu.memory_space<vmem>>, vector<1x16x128xf32>,
    %270 = vector.extract_strided_slice %262 {offsets = [0, 128], sizes = [16, 128], strides = [1, 1]} : vector<16x256xf32> to vector<16x128xf32>
    %271 = arith.addf %151, %270 : vector<16x128xf32>
    %c1_113 = arith.constant 1 : index
    %c0_114 = arith.constant 0 : index
    %c0_115 = arith.constant 0 : index
    %272 = vector.load %arg9[%c1_113, %c0_114, %c0_115] : memref<2x16x128xf32, #tpu.memory_space<vmem>>, vector<1x16x128xf32>
    %273 = vector.shape_cast %272 : vector<1x16x128xf32> to vector<16x128xf32>
    %274 = vector.shape_cast %271 : vector<16x128xf32> to vector<1x16x128xf32>
    tpu.vector_store %arg9[%c1_113, %c0_114, %c0_115], %274 {strides = array<i32>} : memref<2x16x128xf32, #tpu.memory_space<vmem>>, vector<1x16x128xf32>,
    %c3_i32 = arith.constant 3 : i32
    %275 = arith.cmpi eq, %arg1, %c3_i32 : i32
    %276 = arith.extui %275 : i1 to i32
    %c0_i32_116 = arith.constant 0 : i32
    %277 = arith.cmpi ne, %276, %c0_i32_116 : i32
    scf.if %277 {
      %c0_117 = arith.constant 0 : index
      %c0_118 = arith.constant 0 : index
      %c0_119 = arith.constant 0 : index
      %278 = vector.load %arg10[%c0_117, %c0_118, %c0_119] : memref<2x16x128xf32, #tpu.memory_space<vmem>>, vector<2x16x128xf32>
      %c0_120 = arith.constant 0 : index
      %c0_121 = arith.constant 0 : index
      %c0_122 = arith.constant 0 : index
      %279 = vector.load %arg8[%c0_120, %c0_121, %c0_122] : memref<2x16x128xf32, #tpu.memory_space<vmem>>, vector<2x16x128xf32>
      tpu.vector_store %arg8[%c0_120, %c0_121, %c0_122], %278 {strides = array<i32>} : memref<2x16x128xf32, #tpu.memory_space<vmem>>, vector<2x16x128xf32>,
    } else {
    }
    return
  }
  func.func @transform_0(%arg0: i32, %arg1: i32, %arg2: memref<4x3xi32, #tpu.memory_space<smem>>) -> (i32, i32, i32) {
    %c0_i32 = arith.constant 0 : i32
    %c0_i32_0 = arith.constant 0 : i32
    %c0_i32_1 = arith.constant 0 : i32
    return %arg0, %c0_i32, %c0_i32_0 : i32, i32, i32
  }
  func.func @transform_1(%arg0: i32, %arg1: i32, %arg2: memref<4x3xi32, #tpu.memory_space<smem>>) -> (i32, i32, i32) {
    %c0_i32 = arith.constant 0 : i32
    %c0_i32_0 = arith.constant 0 : i32
    %c0_i32_1 = arith.constant 0 : i32
    return %arg1, %c0_i32, %c0_i32_0 : i32, i32, i32
  }
  func.func @transform_2(%arg0: i32, %arg1: i32, %arg2: memref<4x3xi32, #tpu.memory_space<smem>>) -> (i32, i32, i32) {
    %c0_i32 = arith.constant 0 : i32
    %c0_i32_0 = arith.constant 0 : i32
    %c0_i32_1 = arith.constant 0 : i32
    return %arg1, %c0_i32, %c0_i32_0 : i32, i32, i32
  }
  func.func @transform_3(%arg0: i32, %arg1: i32, %arg2: memref<4x3xi32, #tpu.memory_space<smem>>) -> (i32, i32, i32) {
    %c0_i32 = arith.constant 0 : i32
    %c0_i32_0 = arith.constant 0 : i32
    %c0_i32_1 = arith.constant 0 : i32
    return %arg1, %c0_i32, %c0_i32_0 : i32, i32, i32
  }
  func.func @transform_4(%arg0: i32, %arg1: i32, %arg2: memref<4x3xi32, #tpu.memory_space<smem>>) -> (i32, i32, i32) {
    %c0_i32 = arith.constant 0 : i32
    %c0_i32_0 = arith.constant 0 : i32
    %c0_i32_1 = arith.constant 0 : i32
    return %arg1, %c0_i32, %c0_i32_0 : i32, i32, i32
  }
  func.func @transform_5(%arg0: i32, %arg1: i32, %arg2: memref<4x3xi32, #tpu.memory_space<smem>>) -> (i32, i32, i32) {
    %c0_i32 = arith.constant 0 : i32
    %c0_i32_0 = arith.constant 0 : i32
    %c0_i32_1 = arith.constant 0 : i32
    return %arg0, %c0_i32, %c0_i32_0 : i32, i32, i32
  }
}

</mosaic_0001>

<bundles_post_ra>
// kernel: tpu_custom_call.1
= control target key start
LH: loop header
LB: loop body
LE: loop exit
PB: predicated region body
PF: predicated region fallthrough
CT: control target
= control target key end

     0   :  { %s1538_s24 = smov [#allocation6]   ;;  %s1925_s0 = inlined_call_operand.vmem [shape: s32[4,3], index: 0, kind: input, shape index: {}]   ;;  %s1926_s1 = inlined_call_operand.vmem [shape: f32[2,16,128], index: 1, kind: input, shape index: {}]   ;;  %s1927_s2 = inlined_call_operand.hbm [shape: bf16[4,128,128], index: 2, kind: input, shape index: {}]   ;;  %s1928_s3 = inlined_call_operand.vmem [shape: f32[4,11,128], index: 3, kind: input, shape index: {}]   ;;  %s1929_s4 = inlined_call_operand.hbm [shape: bf16[4,128,256], index: 4, kind: input, shape index: {}]   ;;  %s1930_s5 = inlined_call_operand.vmem [shape: f32[4,1,256], index: 5, kind: input, shape index: {}]   ;;  %s1931_s6 = inlined_call_operand.hbm [shape: f32[2,16,128], index: 6, kind: output, shape index: {}]  }
   0x1   :  { %1933 = sst [smem:[#allocation17_spill]] %s1927_s2  ;;  %s12_s23 = sshll.u32 %s1925_s0, 4  ;;  %s13_s23 = int_to_ptr.vmem [resolvable:$true] %s12_s23 }
   0x2   :  { %15 = dma.vmem_to_smem %s13_s23, 64, %s1538_s24, [#allocation5] }
   0x3   :  { %1500 = dma.done.wait [#allocation5], 64 }
   0x4   :  { %1501 = vsyncadd [#allocation5], 4294967232 }
   0x5   :  { %18 = sfence }
   0x6   :  { %19 = vsyncpa [#allocation8], 0 }
   0x7   :  { %21 = vsyncpa [#allocation8 + $0x1], 0 }
   0x8   :  { %22 = vsyncpa [#allocation11], 0 }
   0x9   :  { %24 = vsyncpa [#allocation11 + $0x1], 0 }
   0xa   :  { %25 = vsyncpa [#allocation9], 0  ;;  %s1585_s25 = smov 0   ;;  %s1587_s26 = smov 0  }
   0xb   :  { %s1589_s27 = smov 0   ;;  %s1591_s28 = smov 0  }
   0xc   :  { %s1593_s0 = smov 0   ;;  %s1595_s29 = smov 0  }
   0xd LB: > { %s1932_s30 = sadd.s32 4294967295, %s1536_s29   ;;  %s40_s7 = sadd.s32 1, %s1532_s0  ;;  %s1536_s29 = sphi %s1595_s29, %s31_s29   ;;  %s1532_s0 = sphi %s1593_s0, %s1943_s0   ;;  %s1528_s28 = sphi %s1591_s28, %s1942_s28   ;;  %s1524_s27 = sphi %s1589_s27, %s1941_s27   ;;  %s1520_s26 = sphi %s1587_s26, %s1940_s26   ;;  %s1516_s25 = sphi %s1585_s25, %s1939_s25  }
   0xe   : > { %p41_p0 = scmp.ge.s32.totalorder %s40_s7, 4  ;;  %s76_s8 = sadd.s32 1, %s1524_s27 }
   0xf   : > { %p83_p1 = scmp.ne.s32.totalorder %s1524_s27, %s1520_s26  ;;  %p84_p2 = scmp.eq.s32.totalorder %s1536_s29, 0 }
  0x10   : > { %s1945_s7 = smov (%p41_p0, %s40_s7), 0  ;;  %p89_p4 = scmp.ne.s32.totalorder %s1520_s26, %s1516_s25 }
  0x11   : > { %p1621_p3 = por %p84_p2, %p83_p1  ;;  %s73_s10 = ssub.s32 %s1532_s0, %s1945_s7 }
  0x12   : > { %p90_p5 = scmp.eq.s32.totalorder %s1932_s30, 0  ;;  %p74_p6 = scmp.eq.s32.totalorder %s73_s10, 0 }
  0x13   : > { %p1298_p8 = scmp.lt.s32.totalorder %s1536_s29, 4  ;;  %s1639_s13 = sand.u32 1, %s1524_s27  }
  0x14   : > { %p1630_p7 = por %p90_p5, %p89_p4  ;;  %s1240_s14 = sshll.u32 %s1532_s0, 6 }
  0x15   : > { %s1636_s12 = scalar_select %p74_p6, %s1524_s27, %s76_s8  }
  0x16   : > { %s1121_s15 = sshll.u32 %s1639_s13, 6  ;;  %s1936_s2 = sld [smem:[#allocation17_spill]] }
  0x17   : > { %s231_s20 = scalar_lea.vmem [#allocation7], %s1121_s15  ;;  %p1648_p9 = pnand %p1298_p8, %p1621_p3 }
  0x18   : > { %s239_s21 = sshll.u32 %s231_s20, 4  ;;  %p1127_p10 = scmp.ge.s32.totalorder %s1536_s29, 1  ;;  %s240_s21 = int_to_ptr.vmem [resolvable:$true] %s239_s21 }
  0x19   : > { %p284_p11 = scmp.lt.s32.totalorder %s1536_s29, 5  ;;  %s228_s23 = scalar_lea.sflag [#allocation8], %s1639_s13 }
  0x1a   : > { %s1539_s24 = smov 64   ;;  %s1540_s25 = smov 4  }
  0x1b   : > { %p285_p12 = pnand %p1127_p10, %p284_p11  ;;  %s1124_s8 = sshll.u32 %s1639_s13, 7 }
  0x1c   : > { %s236_s18 = scalar_lea.hbm %s1936_s2, %s1240_s14  ;;  %s1241_s10 = sshll.u32 %s1532_s0, 7 }
  0x1d   : > { %s237_s19 = sshll.u32 %s236_s18, 4  ;;  %s266_s9 = scalar_lea.hbm %s1929_s4, %s1241_s10  ;;  %s238_s19 = int_to_ptr.hbm [resolvable:$true] %s237_s19 }
  0x1e   : > { %1294 = dma.hbm_to_vmem [thread:$0]  (!%p1648_p9), %s238_s19, 1024, %s240_s21, %s228_s23, %s1539_s24, %s1539_s24, %s1540_s25  }
  0x1f   : > { %s267_s16 = sshll.u32 %s266_s9, 4  ;;  %s261_s17 = scalar_lea.vmem [#allocation10], %s1124_s8  ;;  %s268_s16 = int_to_ptr.hbm [resolvable:$true] %s267_s16 }
  0x20   : > { %s269_s18 = sshll.u32 %s261_s17, 4  ;;  %s258_s20 = scalar_lea.sflag [#allocation11], %s1639_s13  ;;  %s270_s18 = int_to_ptr.vmem [resolvable:$true] %s269_s18 }
  0x21   : > { %s1541_s30 = smov 128   ;;  %s1542_s2 = smov 8  }
  0x22   : > { %1297 = dma.hbm_to_vmem [thread:$0]  (!%p1648_p9), %s268_s16, 2048, %s270_s18, %s258_s20, %s1541_s30, %s1541_s30, %s1542_s2  }
  0x23   : > { %288 = sbr.rel (%p285_p12) target bundleno = 1104 (0x450), region = 40  ;;  %s290_s19 = sand.u32 (!%p285_p12), 1, %s1520_s26  }
  0x24   : > { %s1128_s21 = sshll.u32 (!%p285_p12), %s290_s19, 6  ;;  %s291_s23 = scalar_lea.sflag (!%p285_p12), [#allocation8], %s290_s19 }
  0x25   : > { %s1666_s24 = scalar_lea.vmem (!%p285_p12), [#allocation7], %s1128_s21 }
  0x28   : > { %1503 = dma.done.wait (%p1630_p7), %s291_s23, 1024  }
  0x29   : > { %1505 = vsyncadd (%p1630_p7), %s291_s23, 4294966272  ;;  %s1129_s25 = sshll.u32 %s290_s19, 7  ;;  %s301_s13 = scalar_lea.sflag [#allocation11], %s290_s19 }
  0x2a   : > { %s1672_s8 = scalar_lea.vmem [#allocation10], %s1129_s25 }
  0x2b   : > { %1507 = dma.done.wait (%p1630_p7), %s301_s13, 2048  }
  0x2c   : > { %1509 = vsyncadd (%p1630_p7), %s301_s13, 4294965248  ;;  %p354_p13 = scmp.lt.s32.totalorder %s1528_s28, 3  ;;  %p1133_p0 = scmp.ne.s32.totalorder %s1528_s28, 0 }
  0x2e   : > { %s355_s2 = scalar_select %p354_p13, %s1528_s28, 3 }
  0x2f   : > { %367 = sbr.rel (%p1133_p0) target bundleno = 65 (0x41), region = 52 }
  0x30   : > { %s1242_s30 = sshll.u32 %s355_s2, 4  ;;  %s1132_s22 = sshll.u32 %s355_s2, 1 }
  0x31   : > { %s1683_s15 = scalar_lea.vmem %s1928_s3, %s1242_s30  ;;  %s1688_s17 = scalar_lea.vmem %s1930_s5, %s1132_s22 }
  0x34   : > { %v368_v0 = vld [vmem:[%s1926_s1] sm:$0xff]  ;;  %v369_v1 = vld [vmem:[%s1926_s1 + $0x8] sm:$0xff]  ;;  %v370_v2 = vld [vmem:[%s1926_s1 + $0x10] sm:$0xff]  ;;  %v1543_v4 = vmov 0.0  }
  0x35   : > { %372 = vst [vmem:[#allocation2 + $0x10] sm:$0xff] %v368_v0  ;;  %v371_v3 = vld [vmem:[%s1926_s1 + $0x18] sm:$0xff] }
  0x36   : > { %373 = vst [vmem:[#allocation2] sm:$0xff] %v369_v1 }
  0x37   : > { %374 = vst [vmem:[#allocation2 + $0x18] sm:$0xff] %v370_v2 }
  0x38   : > { %375 = vst [vmem:[#allocation2 + $0x8] sm:$0xff] %v371_v3 }
  0x39   : > { %376 = vst [vmem:[#allocation3] sm:$0xff] %v1543_v4 }
  0x3a   : > { %377 = vst [vmem:[#allocation3 + $0x18] sm:$0xff] %v1543_v4 }
  0x3b   : > { %378 = vst [vmem:[#allocation3 + $0x8] sm:$0xff] %v1543_v4 }
  0x3c   : > { %379 = vst [vmem:[#allocation3 + $0x10] sm:$0xff] %v1543_v4 }
  0x3d   : > { %380 = vst [vmem:[#allocation4] sm:$0x3] %v1543_v4 }
  0x3e   : > { %381 = vst [vmem:[#allocation4 + $0x18] sm:$0x3] %v1543_v4 }
  0x3f   : > { %382 = vst [vmem:[#allocation4 + $0x12] sm:$0x3] %v1543_v4 }
  0x40   : > { %383 = vst [vmem:[#allocation4 + $0x2a] sm:$0x3] %v1543_v4 }
  0x41 PF: > { %v1250_v5 = vld [vmem:[%s1666_s24 + $0x38] sm:$0xff]  ;;  %v1249_v6 = vld [vmem:[%s1666_s24 + $0x30] sm:$0xff]  ;;  %v1248_v7 = vld [vmem:[%s1666_s24 + $0x28] sm:$0xff]  ;;  %s1753_s30 = sshll.u32 %s1528_s28, 7  ;;  %p1235_p1 = scmp.ne.s32.totalorder %s1528_s28, 3 }
  0x42   : > { %477 = vmatpush.bf16.msra.mxu0 %v1250_v5  ;;  %764 = vmatpush.bf16.msra.mxu3 %v1250_v5  ;;  %v1247_v8 = vld [vmem:[%s1666_s24 + $0x20] sm:$0xff]  ;;  %v1246_v9 = vld [vmem:[%s1666_s24 + $0x18] sm:$0xff]  ;;  %v1245_v10 = vld [vmem:[%s1666_s24 + $0x10] sm:$0xff]  ;;  %s567_s22 = sadd.s32 2, %s1753_s30  ;;  %s551_s10 = sld [smem:[#allocation6 + %s1753_s30]] }
  0x43   : > { %v1244_v11 = vld [vmem:[%s1666_s24 + $0x8] sm:$0xff]  ;;  %v1243_v12 = vld [vmem:[%s1666_s24] sm:$0xff]  ;;  %v1713_v14 = vld [vmem:[#allocation2] sm:$0xff]  ;;  %s568_s14 = sld [smem:[#allocation6 + %s567_s22]] }
  0x44   : > { %v1711_v13 = vld [vmem:[#allocation2 + $0x10] sm:$0xff]  ;;  %v1717_v16 = vld [vmem:[#allocation2 + $0x18] sm:$0xff]  ;;  %v1719_v17 = vld [vmem:[#allocation2 + $0x8] sm:$0xff]  ;;  %s854_s21 = sld [smem:[#allocation6 + %s567_s22]] }
  0x45   : > { %v427_v15 = vpack.c.bf16 %v1713_v14, %v1711_v13  ;;  %v763_v18 = vpack.c.bf16 %v1719_v17, %v1717_v16  ;;  %v1358_v20 = vld [vmem:[%s1683_s15] ss:$0 sm:$0xff]  ;;  %v1359_v22 = vld [vmem:[%s1683_s15 + $0x3] ss:$0 sm:$0xff] }
  0x46   : > { %478 = vmatpush.bf16.msra.mxu0 %v1249_v6  ;;  %765 = vmatpush.bf16.msra.mxu3 %v1249_v6 }
  0x48   : > { %s552_s9 = scalar_lea.vmem [#allocation4], %s551_s10 }
  0x49   : > { %s569_s16 = scalar_lea.vmem [#allocation4], %s568_s14 }
  0x4a   : > { %479 = vmatpush.bf16.msra.mxu0 %v1248_v7  ;;  %766 = vmatpush.bf16.msra.mxu3 %v1248_v7  ;;  %s1054_s25 = scalar_lea.vmem [#allocation4], %s854_s21 }
  0x4e   : > { %480 = vmatpush.bf16.msra.mxu0 %v1247_v8  ;;  %767 = vmatpush.bf16.msra.mxu3 %v1247_v8  ;;  %v1746_v8 = vld [vmem:[%s1683_s15 + $0x1] sm:$0x1] }
  0x52   : > { %481 = vmatpush.bf16.msra.mxu0 %v1246_v9  ;;  %768 = vmatpush.bf16.msra.mxu3 %v1246_v9 }
  0x56   : > { %482 = vmatpush.bf16.msra.mxu0 %v1245_v10  ;;  %769 = vmatpush.bf16.msra.mxu3 %v1245_v10 }
  0x5a   : > { %483 = vmatpush.bf16.msra.mxu0 %v1244_v11  ;;  %770 = vmatpush.bf16.msra.mxu3 %v1244_v11 }
  0x5e   : > { %484 = vmatpush.bf16.msra.mxu0 %v1243_v12  ;;  %771 = vmatpush.bf16.msra.mxu3 %v1243_v12  ;;  %v1750_v12 = vld [vmem:[%s1683_s15 + $0x2] sm:$0x1] }
  0x61   : > { %485 = vmatmul.bf16.vlgmr.msra.gmra.mxu0 %v427_v15  ;;  %772 = vmatmul.bf16.vlgmr.msra.gmra.mxu3 %v763_v18 }
  0xde   : > { %v486_v19 = vpop.f32.mrf.mxu0 }
  0xdf   : > { %v487_v21 = vadd.f32 %v1358_v20, %v486_v19 }
  0xe1   : > { %v494_v24 = vmul.f32 %v1359_v22, %v487_v21  ;;  %vm491_vm0 = vcmp.ge.f32.partialorder %v487_v21, 0.0 }
  0xe3   : > { %v1725_v27 = vsel %vm491_vm0, %v487_v21, %v494_v24 }
  0xe4   : > { %v509_v31 = vmul.f32 %v1725_v27, %v1725_v27  ;;  %v773_v47 = vpop.f32.mrf.mxu3 }
  0xe5   : > { %v774_v51 = vadd.f32 %v1358_v20, %v773_v47 }
  0xe6   : > { %v488_v23 = vpop.f32.mrf.mxu0 }
  0xe7   : > { %v489_v25 = vadd.f32 %v1358_v20, %v488_v23  ;;  %v780_v56 = vmul.f32 %v1359_v22, %v774_v51  ;;  %vm778_vm2 = vcmp.ge.f32.partialorder %v774_v51, 0.0 }
  0xe9   : > { %v495_v26 = vmul.f32 %v1359_v22, %v489_v25  ;;  %vm492_vm1 = vcmp.ge.f32.partialorder %v489_v25, 0.0  ;;  %v1735_v59 = vsel %vm778_vm2, %v774_v51, %v780_v56 }
  0xea   : > { %v795_v63 = vmul.f32 %v1735_v59, %v1735_v59 }
  0xeb   : > { %v1727_v28 = vsel %vm492_vm1, %v489_v25, %v495_v26  ;;  %v1360_v25 = vld [vmem:[%s1683_s15 + $0x8] ss:$0 sm:$0xff]  ;;  %v1361_v26 = vld [vmem:[%s1683_s15 + $0x9] ss:$0 sm:$0xff] }
  0xec   : > { %v498_v29 = vadd.f32 %v1727_v28, %v1725_v27  ;;  %v510_v30 = vmul.f32 %v1727_v28, %v1727_v28  ;;  %v775_v50 = vpop.f32.mrf.mxu3 }
  0xed   : > { %v776_v52 = vadd.f32 %v1358_v20, %v775_v50 }
  0xee   : > { %499 = vadd.xlane.f32.xlu0 %v498_v29  ;;  %v511_v32 = vadd.f32 %v510_v30, %v509_v31  ;;  %v1362_v29 = vld [vmem:[%s1683_s15 + $0xa] ss:$0 sm:$0xff] }
  0xef   : > { %v781_v57 = vmul.f32 %v1359_v22, %v776_v52  ;;  %vm779_vm3 = vcmp.ge.f32.partialorder %v776_v52, 0.0 }
  0xf1   : > { %v1737_v60 = vsel %vm779_vm3, %v776_v52, %v781_v57 }
  0xf2   : > { %v784_v61 = vadd.f32 %v1737_v60, %v1735_v59  ;;  %v796_v0 = vmul.f32 %v1737_v60, %v1737_v60 }
  0xf4   : > { %785 = vadd.xlane.f32.xlu2 %v784_v61  ;;  %v797_v2 = vadd.f32 %v796_v0, %v795_v63 }
  0xf6   : > { %512 = vadd.xlane.f32.xlu0 %v511_v32 }
  0xfc   : > { %798 = vadd.xlane.f32.xlu2 %v797_v2 }
 0x161   : > { %v500_v33 = vpop.xlane.xlu0 %499 }
 0x162   : > { %v501_v34 = vrot.slane %v500_v33, 4 }
 0x164   : > { %v502_v35 = vadd.f32 %v501_v34, %v500_v33 }
 0x166   : > { %v503_v36 = vrot.slane %v502_v35, 2 }
 0x168   : > { %v504_v37 = vadd.f32 %v503_v36, %v502_v35 }
 0x169   : > { %v513_v38 = vpop.xlane.xlu0 %512 }
 0x16a   : > { %v514_v39 = vrot.slane %v513_v38, 4  ;;  %v505_v40 = vrot.slane %v504_v37, 1 }
 0x16c   : > { %v515_v41 = vadd.f32 %v514_v39, %v513_v38  ;;  %v506_v42 = vadd.f32 %v505_v40, %v504_v37  ;;  %v1766_v40 = vld [vmem:[%s1683_s15 + $0x4] ss:$0 sm:$0xff] }
 0x16e   : > { %v516_v43 = vrot.slane %v515_v41, 2  ;;  %1267 = vpush %v506_v42 }
 0x170   : > { %v517_v44 = vadd.f32 %v516_v43, %v515_v41  ;;  %v1769_v43 = vld [vmem:[%s1683_s15 + $0x7] ss:$0 sm:$0xff] }
 0x172   : > { %v518_v45 = vrot.slane %v517_v44, 1 }
 0x174   : > { %v519_v46 = vadd.f32 %v518_v45, %v517_v44 }
 0x176   : > { %1269 = vpush %v519_v46 }
 0x19f   : > { %s1268_s24 = spop %1267 }
 0x1a0   : > { %v508_v48 = vstv %s1268_s24 }
 0x1a1   : > { %v522_v49 = vmul.f32 0.001953125, %v508_v48 }
 0x1a3   : > { %v524_v53 = vmul.f32 %v522_v49, %v522_v49 }
 0x1a7   : > { %s1270_s2 = spop %1269 }
 0x1a8   : > { %v521_v54 = vstv %s1270_s2 }
 0x1a9   : > { %v523_v55 = vmul.f32 0.001953125, %v521_v54  ;;  %v786_v54 = vpop.xlane.xlu2 %785 }
 0x1aa   : > { %v787_v56 = vrot.slane %v786_v54, 4 }
 0x1ab   : > { %v525_v58 = vsub.f32 %v523_v55, %v524_v53 }
 0x1ac   : > { %v788_v63 = vadd.f32 %v787_v56, %v786_v54  ;;  %v1193_v54 = vld [vmem:[%s1672_s8 + $0x30] sm:$0xf]  ;;  %v1257_v56 = vld [vmem:[%s1672_s8 + $0x34] sm:$0xf] }
 0x1ad   : > { %v526_v62 = vmax.f32 %v525_v58, 0.0 }
 0x1af   : > { %v527_v1 = vadd.f32 1e-05, %v526_v62 }
 0x1b1   : > { %1368 = vrsqrt.f32 %v527_v1  ;;  %vm534_vm5 = vweird.f32 %v527_v1  ;;  %v799_v55 = vpop.xlane.xlu2 %798 }
 0x1b2   : > { %v800_v58 = vrot.slane %v799_v55, 4 }
 0x1b4   : > { %v801_v0 = vadd.f32 %v800_v58, %v799_v55  ;;  %v1258_v55 = vld [vmem:[%s1672_s8 + $0x34] sm:$0xf0]  ;;  %v1195_v58 = vld [vmem:[%s1672_s8 + $0x38] sm:$0xf0] }
 0x1b7   : > { %v1369_v3 = vpop.eup %1368 }
 0x1b8   : > { %v529_v4 = vmul.f32 %v1369_v3, %v527_v1  ;;  %vm535_vm4 = vweird.f32 %v1369_v3 }
 0x1b9   : > { %vm536_vm6 = vmor %vm534_vm5, %vm535_vm4 }
 0x1ba   : > { %v530_v5 = vmul.f32 %v1369_v3, %v529_v4 }
 0x1bc   : > { %v531_v6 = vmul.f32 0.5, %v530_v5  ;;  %v802_v5 = vrot.slane %v801_v0, 2 }
 0x1be   : > { %v532_v7 = vsub.f32 1.5, %v531_v6 }
 0x1c0   : > { %v533_v9 = vmul.f32 %v1369_v3, %v532_v7 }
 0x1c2   : > { %v537_v10 = vsel %vm536_vm6, %v1369_v3, %v533_v9  ;;  %v789_v3 = vrot.slane %v788_v63, 2 }
 0x1c3   : > { %v538_v11 = vmul.f32 %v537_v10, %v1746_v8 }
 0x1c5   : > { %v539_v15 = vmul.f32 %v538_v11, %v522_v49  ;;  %v541_v18 = vperm.slane %v538_v11, 0  ;;  %v790_v11 = vadd.f32 %v789_v3, %v788_v63  ;;  %v1185_v63 = vld [vmem:[%s1672_s8 + $0x20] sm:$0xf]  ;;  %v1187_v3 = vld [vmem:[%s1672_s8 + $0x28] sm:$0xf0] }
 0x1c7   : > { %v540_v19 = vsub.f32 %v1750_v12, %v539_v15  ;;  %v542_v20 = vmul.f32 %v541_v18, %v1725_v27  ;;  %v543_v21 = vmul.f32 %v541_v18, %v1727_v28  ;;  %v803_v15 = vadd.f32 %v802_v5, %v801_v0  ;;  %v1256_v0 = vld [vmem:[%s1672_s8 + $0x24] sm:$0xf0] }
 0x1c9   : > { %v544_v22 = vperm.slane %v540_v19, 0 }
 0x1cb   : > { %v545_v23 = vadd.f32 %v544_v22, %v542_v20  ;;  %v546_v24 = vadd.f32 %v544_v22, %v543_v21  ;;  %v791_v20 = vrot.slane %v790_v11, 1  ;;  %v804_v22 = vrot.slane %v803_v15, 1 }
 0x1cd   : > { %547 = vst [vmem:[#allocation4 + $0x2] sm:$0xff] %v545_v23  ;;  %v562_v33 = vmul.f32 %v1361_v26, %v545_v23  ;;  %v563_v34 = vmul.f32 %v1361_v26, %v546_v24  ;;  %v1225_v26 = vld [vmem:[%s1672_s8 + $0x70] sm:$0xf] }
 0x1ce   : > { %548 = vst [vmem:[#allocation4 + $0xa] sm:$0xff] %v546_v24  ;;  %v792_v24 = vadd.f32 %v791_v20, %v790_v11 }
 0x1d5   : > { %v553_v30 = vld [vmem:[%s552_s9] sm:$0xff]  ;;  %v554_v31 = vld [vmem:[%s552_s9 + $0x8] sm:$0xff] }
 0x1d6   : > { %v570_v27 = vld [vmem:[%s569_s16] sm:$0xff]  ;;  %v556_v32 = vmul.f32 %v1360_v25, %v553_v30  ;;  %v557_v28 = vmul.f32 %v1360_v25, %v554_v31  ;;  %v571_v35 = vld [vmem:[%s569_s16 + $0x8] sm:$0xff]  ;;  %v805_v25 = vadd.f32 %v804_v22, %v803_v15 }
 0x1d7   : > { %v573_v38 = vmul.f32 %v1362_v29, %v570_v27  ;;  %v574_v39 = vmul.f32 %v1362_v29, %v571_v35  ;;  %v1266_v29 = vld [vmem:[%s1672_s8 + $0x74] sm:$0xf0]  ;;  %v1265_v30 = vld [vmem:[%s1672_s8 + $0x74] sm:$0xf]  ;;  %v1227_v27 = vld [vmem:[%s1672_s8 + $0x78] sm:$0xf0] }
 0x1d8   : > { %v564_v36 = vadd.f32 %v562_v33, %v556_v32  ;;  %v565_v37 = vadd.f32 %v563_v34, %v557_v28  ;;  %v1226_v31 = vor.u32 %v1266_v29, %v1225_v26  ;;  %v1789_v32 = vor.u32 %v1265_v30, %v1227_v27  ;;  %v1217_v28 = vld [vmem:[%s1672_s8 + $0x60] sm:$0xf]  ;;  %v1264_v33 = vld [vmem:[%s1672_s8 + $0x64] sm:$0xf0]  ;;  %v1263_v34 = vld [vmem:[%s1672_s8 + $0x64] sm:$0xf] }
 0x1d9   : > { %v1218_v35 = vor.u32 %v1264_v33, %v1217_v28  ;;  %v1179_v15 = vld [vmem:[%s1672_s8 + $0x18] sm:$0xf0]  ;;  %v1252_v26 = vld [vmem:[%s1672_s8 + $0x4] sm:$0xf0]  ;;  %v1251_v27 = vld [vmem:[%s1672_s8 + $0x4] sm:$0xf] }
 0x1da   : > { %v575_v41 = vadd.f32 %v573_v38, %v564_v36  ;;  %v576_v42 = vadd.f32 %v574_v39, %v565_v37  ;;  %722 = vmatpush.bf16.msra.mxu1 %v1226_v31  ;;  %922 = vmatpush.bf16.msrb.mxu0 %v1226_v31  ;;  %v1219_v36 = vld [vmem:[%s1672_s8 + $0x68] sm:$0xf0]  ;;  %v1209_v38 = vld [vmem:[%s1672_s8 + $0x50] sm:$0xf]  ;;  %v1262_v39 = vld [vmem:[%s1672_s8 + $0x54] sm:$0xf0] }
 0x1db   : > { %736 = vmatpush.bf16.msra.mxu2 %v1789_v32  ;;  %v1796_v37 = vor.u32 %v1263_v34, %v1219_v36  ;;  %v1171_v28 = vld [vmem:[%s1672_s8 + $0x8] sm:$0xf0] }
 0x1dc   : > { %v578_v44 = vadd.f32 %v1766_v40, %v575_v41  ;;  %v579_v45 = vadd.f32 %v1766_v40, %v576_v42  ;;  %v1261_v41 = vld [vmem:[%s1672_s8 + $0x54] sm:$0xf]  ;;  %v1210_v42 = vor.u32 %v1262_v39, %v1209_v38  ;;  %v1174_v34 = vor.u32 %v1251_v27, %v1171_v28 }
 0x1de   : > { %vm580_vm7 = vcmp.ge.f32.partialorder %v578_v44, 0.0  ;;  %vm581_vm8 = vcmp.ge.f32.partialorder %v579_v45, 0.0  ;;  %v583_v46 = vmul.f32 %v1769_v43, %v578_v44  ;;  %v584_v47 = vmul.f32 %v1769_v43, %v579_v45  ;;  %723 = vmatpush.bf16.msra.mxu1 %v1218_v35  ;;  %923 = vmatpush.bf16.msrb.mxu0 %v1218_v35 }
 0x1df   : > { %737 = vmatpush.bf16.msra.mxu2 %v1796_v37 }
 0x1e0   : > { %v1775_v48 = vsel %vm580_vm7, %v578_v44, %v583_v46  ;;  %v1777_v49 = vsel %vm581_vm8, %v579_v45, %v584_v47  ;;  %v1211_v44 = vld [vmem:[%s1672_s8 + $0x58] sm:$0xf0]  ;;  %v1201_v46 = vld [vmem:[%s1672_s8 + $0x40] sm:$0xf]  ;;  %v1260_v47 = vld [vmem:[%s1672_s8 + $0x44] sm:$0xf0] }
 0x1e1   : > { %v587_v50 = vadd.f32 %v1777_v49, %v1775_v48  ;;  %v598_v51 = vmul.f32 %v1775_v48, %v1775_v48  ;;  %v599_v52 = vmul.f32 %v1777_v49, %v1777_v49  ;;  %v1803_v45 = vor.u32 %v1261_v41, %v1211_v44 }
 0x1e2   : > { %724 = vmatpush.bf16.msra.mxu1 %v1210_v42  ;;  %924 = vmatpush.bf16.msrb.mxu0 %v1210_v42 }
 0x1e3   : > { %588 = vadd.xlane.f32.xlu1 %v587_v50  ;;  %v600_v53 = vadd.f32 %v599_v52, %v598_v51  ;;  %738 = vmatpush.bf16.msra.mxu2 %v1803_v45  ;;  %v1259_v50 = vld [vmem:[%s1672_s8 + $0x44] sm:$0xf]  ;;  %v1202_v51 = vor.u32 %v1260_v47, %v1201_v46  ;;  %v1203_v52 = vld [vmem:[%s1672_s8 + $0x48] sm:$0xf0] }
 0x1e6   : > { %725 = vmatpush.bf16.msra.mxu1 %v1202_v51  ;;  %925 = vmatpush.bf16.msrb.mxu0 %v1202_v51 }
 0x1eb   : > { %601 = vadd.xlane.f32.xlu1 %v600_v53  ;;  %v1810_v53 = vor.u32 %v1259_v50, %v1203_v52 }
 0x1ed   : > { %739 = vmatpush.bf16.msra.mxu2 %v1810_v53 }
 0x256   : > { %v589_v57 = vpop.xlane.xlu1 %588 }
 0x257   : > { %v590_v61 = vrot.slane %v589_v57, 4 }
 0x259   : > { %v591_v62 = vadd.f32 %v590_v61, %v589_v57  ;;  %v1194_v57 = vor.u32 %v1258_v55, %v1193_v54  ;;  %v1817_v61 = vor.u32 %v1257_v56, %v1195_v58  ;;  %v1845_v54 = vld [vmem:[%s1683_s15 + $0x5] sm:$0x1] }
 0x25b   : > { %v592_v1 = vrot.slane %v591_v62, 2  ;;  %726 = vmatpush.bf16.msra.mxu1 %v1194_v57  ;;  %926 = vmatpush.bf16.msrb.mxu0 %v1194_v57  ;;  %v1850_v57 = vld [vmem:[%s1683_s15 + $0x6] sm:$0x1] }
 0x25c   : > { %740 = vmatpush.bf16.msra.mxu2 %v1817_v61 }
 0x25d   : > { %v593_v2 = vadd.f32 %v592_v1, %v591_v62  ;;  %v1255_v1 = vld [vmem:[%s1672_s8 + $0x24] sm:$0xf] }
 0x25e   : > { %v602_v4 = vpop.xlane.xlu1 %601  ;;  %v1826_v5 = vor.u32 %v1255_v1, %v1187_v3 }
 0x25f   : > { %v603_v6 = vrot.slane %v602_v4, 4  ;;  %v594_v7 = vrot.slane %v593_v2, 1 }
 0x260   : > { %741 = vmatpush.bf16.msra.mxu2 %v1826_v5 }
 0x261   : > { %v604_v9 = vadd.f32 %v603_v6, %v602_v4  ;;  %v595_v10 = vadd.f32 %v594_v7, %v593_v2  ;;  %v1186_v2 = vor.u32 %v1256_v0, %v1185_v63  ;;  %v1177_v6 = vld [vmem:[%s1672_s8 + $0x10] sm:$0xf]  ;;  %v1254_v7 = vld [vmem:[%s1672_s8 + $0x14] sm:$0xf0] }
 0x262   : > { %v1178_v11 = vor.u32 %v1254_v7, %v1177_v6 }
 0x263   : > { %v605_v18 = vrot.slane %v604_v9, 2  ;;  %1271 = vpush %v595_v10  ;;  %727 = vmatpush.bf16.msra.mxu1 %v1186_v2  ;;  %927 = vmatpush.bf16.msrb.mxu0 %v1186_v2 }
 0x265   : > { %v606_v19 = vadd.f32 %v605_v18, %v604_v9  ;;  %v1253_v9 = vld [vmem:[%s1672_s8 + $0x14] sm:$0xf] }
 0x267   : > { %v607_v21 = vrot.slane %v606_v19, 1  ;;  %728 = vmatpush.bf16.msra.mxu1 %v1178_v11  ;;  %928 = vmatpush.bf16.msrb.mxu0 %v1178_v11 }
 0x269   : > { %v608_v23 = vadd.f32 %v607_v21, %v606_v19  ;;  %v1182_v21 = vor.u32 %v1253_v9, %v1179_v15 }
 0x26b   : > { %1273 = vpush %v608_v23  ;;  %742 = vmatpush.bf16.msra.mxu2 %v1182_v21 }
 0x26c   : > { %1275 = vpush %v792_v24 }
 0x26d   : > { %1277 = vpush %v805_v25  ;;  %v1169_v25 = vld [vmem:[%s1672_s8] sm:$0xf]  ;;  %s837_s8 = sld [smem:[#allocation6 + %s1753_s30]] }
 0x26e   : > { %v1170_v31 = vor.u32 %v1252_v26, %v1169_v25 }
 0x26f   : > { %743 = vmatpush.bf16.msra.mxu2 %v1174_v34 }
 0x270   : > { %729 = vmatpush.bf16.msra.mxu1 %v1170_v31  ;;  %929 = vmatpush.bf16.msrb.mxu0 %v1170_v31 }
 0x273   : > { %s1052_s23 = scalar_lea.vmem [#allocation4], %s837_s8 }
 0x274   : > { %936 = vmatpush.bf16.msrb.mxu1 %v1789_v32 }
 0x278   : > { %937 = vmatpush.bf16.msrb.mxu1 %v1796_v37 }
 0x27c   : > { %938 = vmatpush.bf16.msrb.mxu1 %v1803_v45 }
 0x280   : > { %939 = vmatpush.bf16.msrb.mxu1 %v1810_v53 }
 0x284   : > { %940 = vmatpush.bf16.msrb.mxu1 %v1817_v61 }
 0x288   : > { %941 = vmatpush.bf16.msrb.mxu1 %v1826_v5 }
 0x28c   : > { %942 = vmatpush.bf16.msrb.mxu1 %v1182_v21 }
 0x290   : > { %943 = vmatpush.bf16.msrb.mxu1 %v1174_v34 }
 0x294   : > { %s1272_s11 = spop %1271 }
 0x295   : > { %v597_v62 = vstv %s1272_s11 }
 0x296   : > { %v1824_v4 = vmul.f32 0.001953125, %v597_v62 }
 0x298   : > { %v613_v18 = vmul.f32 %v1824_v4, %v1824_v4 }
 0x29c   : > { %s1274_s18 = spop %1273 }
 0x29d   : > { %v610_v10 = vstv %s1274_s18  ;;  %s1276_s20 = spop %1275 }
 0x29e   : > { %v612_v19 = vmul.f32 0.001953125, %v610_v10  ;;  %v794_v20 = vstv %s1276_s20  ;;  %s1278_s19 = spop %1277 }
 0x29f   : > { %v808_v22 = vmul.f32 0.001953125, %v794_v20  ;;  %v807_v23 = vstv %s1278_s19 }
 0x2a0   : > { %v614_v24 = vsub.f32 %v612_v19, %v613_v18  ;;  %v809_v30 = vmul.f32 0.001953125, %v807_v23  ;;  %v1366_v18 = vld [vmem:[%s1683_s15 + $0x9] ss:$0 sm:$0xff]  ;;  %v1367_v19 = vld [vmem:[%s1683_s15 + $0xa] ss:$0 sm:$0xff] }
 0x2a1   : > { %v810_v29 = vmul.f32 %v808_v22, %v808_v22 }
 0x2a2   : > { %v615_v33 = vmax.f32 %v614_v24, 0.0 }
 0x2a3   : > { %v811_v35 = vsub.f32 %v809_v30, %v810_v29 }
 0x2a4   : > { %v616_v36 = vadd.f32 1e-05, %v615_v33 }
 0x2a5   : > { %v812_v38 = vmax.f32 %v811_v35, 0.0 }
 0x2a6   : > { %1370 = vrsqrt.f32 %v616_v36  ;;  %vm623_vm10 = vweird.f32 %v616_v36 }
 0x2a7   : > { %v813_v39 = vadd.f32 1e-05, %v812_v38 }
 0x2a9   : > { %1372 = vrsqrt.f32 %v813_v39  ;;  %vm820_vm13 = vweird.f32 %v813_v39 }
 0x2ac   : > { %v1371_v41 = vpop.eup %1370 }
 0x2ad   : > { %v618_v42 = vmul.f32 %v1371_v41, %v616_v36  ;;  %vm624_vm9 = vweird.f32 %v1371_v41 }
 0x2ae   : > { %vm625_vm11 = vmor %vm623_vm10, %vm624_vm9 }
 0x2af   : > { %v1373_v44 = vpop.eup %1372  ;;  %v619_v46 = vmul.f32 %v1371_v41, %v618_v42 }
 0x2b0   : > { %v815_v47 = vmul.f32 %v1373_v44, %v813_v39  ;;  %vm821_vm12 = vweird.f32 %v1373_v44 }
 0x2b1   : > { %v620_v50 = vmul.f32 0.5, %v619_v46  ;;  %vm822_vm14 = vmor %vm820_vm13, %vm821_vm12  ;;  %v416_v46 = vld [vmem:[%s1688_s17] sm:$0x3] }
 0x2b2   : > { %v816_v51 = vmul.f32 %v1373_v44, %v815_v47  ;;  %v1881_v47 = vperm.slane %v416_v46, 0 }
 0x2b3   : > { %v621_v52 = vsub.f32 1.5, %v620_v50  ;;  %v750_v50 = vld [vmem:[#allocation3] sm:$0xff] }
 0x2b4   : > { %v817_v32 = vmul.f32 0.5, %v816_v51 }
 0x2b5   : > { %v622_v37 = vmul.f32 %v1371_v41, %v621_v52 }
 0x2b6   : > { %v818_v45 = vsub.f32 1.5, %v817_v32  ;;  %v1884_v32 = vperm.slane %v416_v46, 1 }
 0x2b7   : > { %v626_v55 = vsel %vm625_vm11, %v1371_v41, %v622_v37 }
 0x2b8   : > { %v819_v56 = vmul.f32 %v1373_v44, %v818_v45  ;;  %v627_v53 = vmul.f32 %v626_v55, %v1845_v54 }
 0x2ba   : > { %v823_v58 = vsel %vm822_vm14, %v1373_v44, %v819_v56  ;;  %v628_v61 = vmul.f32 %v627_v53, %v1824_v4  ;;  %v630_v62 = vperm.slane %v627_v53, 0  ;;  %v751_v56 = vld [vmem:[#allocation3 + $0x18] sm:$0xff] }
 0x2bb   : > { %v824_v63 = vmul.f32 %v823_v58, %v1746_v8 }
 0x2bc   : > { %v629_v0 = vsub.f32 %v1850_v57, %v628_v61  ;;  %v631_v3 = vmul.f32 %v630_v62, %v1775_v48  ;;  %v632_v5 = vmul.f32 %v630_v62, %v1777_v49 }
 0x2bd   : > { %v825_v1 = vmul.f32 %v824_v63, %v808_v22  ;;  %v827_v2 = vperm.slane %v824_v63, 0 }
 0x2be   : > { %v633_v6 = vperm.slane %v629_v0, 0 }
 0x2bf   : > { %v826_v7 = vsub.f32 %v1750_v12, %v825_v1  ;;  %v828_v8 = vmul.f32 %v827_v2, %v1735_v59  ;;  %v829_v10 = vmul.f32 %v827_v2, %v1737_v60  ;;  %v1365_v12 = vld [vmem:[%s1683_s15 + $0x8] ss:$0 sm:$0xff] }
 0x2c0   : > { %v634_v9 = vadd.f32 %v633_v6, %v631_v3  ;;  %v635_v4 = vadd.f32 %v633_v6, %v632_v5 }
 0x2c1   : > { %v830_v11 = vperm.slane %v826_v7, 0 }
 0x2c2   : > { %v636_v48 = vpack.c.bf16 %v635_v4, %v634_v9 }
 0x2c3   : > { %v831_v15 = vadd.f32 %v830_v11, %v828_v8  ;;  %v832_v49 = vadd.f32 %v830_v11, %v829_v10 }
 0x2c4   : > { %730 = vmatmul.bf16.vlgmr.msra.gmra.mxu1 %v636_v48  ;;  %744 = vmatmul.bf16.vlgmr.msra.gmra.mxu2 %v636_v48 }
 0x2c5   : > { %834 = vst [vmem:[#allocation4 + $0x1a] sm:$0xff] %v831_v15  ;;  %v849_v23 = vmul.f32 %v1366_v18, %v831_v15  ;;  %v850_v24 = vmul.f32 %v1366_v18, %v832_v49 }
 0x2c6   : > { %835 = vst [vmem:[#allocation4 + $0x22] sm:$0xff] %v832_v49 }
 0x2cd   : > { %v1231_v20 = vld [vmem:[%s1052_s23 + $0x18] sm:$0xff]  ;;  %v1232_v21 = vld [vmem:[%s1052_s23 + $0x20] sm:$0xff] }
 0x2ce   : > { %v1233_v59 = vld [vmem:[%s1054_s25 + $0x18] sm:$0xff]  ;;  %v843_v22 = vmul.f32 %v1365_v12, %v1231_v20  ;;  %v844_v60 = vmul.f32 %v1365_v12, %v1232_v21  ;;  %v1234_v25 = vld [vmem:[%s1054_s25 + $0x20] sm:$0xff] }
 0x2cf   : > { %v860_v30 = vmul.f32 %v1367_v19, %v1233_v59  ;;  %v861_v31 = vmul.f32 %v1367_v19, %v1234_v25 }
 0x2d0   : > { %v851_v26 = vadd.f32 %v849_v23, %v843_v22  ;;  %v852_v29 = vadd.f32 %v850_v24, %v844_v60 }
 0x2d2   : > { %v862_v27 = vadd.f32 %v860_v30, %v851_v26  ;;  %v863_v28 = vadd.f32 %v861_v31, %v852_v29 }
 0x2d4   : > { %v864_v33 = vadd.f32 %v1766_v40, %v862_v27  ;;  %v865_v34 = vadd.f32 %v1766_v40, %v863_v28 }
 0x2d6   : > { %vm866_vm15 = vcmp.ge.f32.partialorder %v864_v33, 0.0  ;;  %vm867_vm0 = vcmp.ge.f32.partialorder %v865_v34, 0.0  ;;  %v868_v35 = vmul.f32 %v1769_v43, %v864_v33  ;;  %v869_v36 = vmul.f32 %v1769_v43, %v865_v34 }
 0x2d8   : > { %v1870_v38 = vsel %vm866_vm15, %v864_v33, %v868_v35  ;;  %v1872_v39 = vsel %vm867_vm0, %v865_v34, %v869_v36 }
 0x2d9   : > { %v872_v41 = vadd.f32 %v1872_v39, %v1870_v38  ;;  %v883_v42 = vmul.f32 %v1870_v38, %v1870_v38  ;;  %v884_v44 = vmul.f32 %v1872_v39, %v1872_v39 }
 0x2db   : > { %873 = vadd.xlane.f32.xlu0 %v872_v41  ;;  %v885_v40 = vadd.f32 %v884_v44, %v883_v42 }
 0x2dd   : > { %886 = vadd.xlane.f32.xlu1 %v885_v40  ;;  %v951_v40 = vld [vmem:[#allocation3 + $0x8] sm:$0xff] }
 0x341   : > { %v731_v43 = vpop.f32.mrf.mxu1 }
 0x342   : > { %v732_v51 = vadd.f32 %v731_v43, %v1881_v47 }
 0x344   : > { %v752_v52 = vadd.f32 %v750_v50, %v732_v51 }
 0x346   : > { %754 = vst [vmem:[#allocation3] sm:$0xff] %v752_v52 }
 0x347   : > { %v745_v37 = vpop.f32.mrf.mxu2 }
 0x348   : > { %v746_v45 = vadd.f32 %v745_v37, %v1884_v32 }
 0x349   : > { %v733_v55 = vpop.f32.mrf.mxu1 }
 0x34a   : > { %v756_v53 = vadd.f32 %v746_v45, %v1711_v13  ;;  %v734_v58 = vadd.f32 %v733_v55, %v1881_v47 }
 0x34c   : > { %758 = vst [vmem:[#allocation2 + $0x10] sm:$0xff] %v756_v53  ;;  %v753_v61 = vadd.f32 %v751_v56, %v734_v58 }
 0x34e   : > { %755 = vst [vmem:[#allocation3 + $0x18] sm:$0xff] %v753_v61  ;;  %v874_v62 = vpop.xlane.xlu0 %873 }
 0x34f   : > { %v875_v63 = vrot.slane %v874_v62, 4  ;;  %v747_v0 = vpop.f32.mrf.mxu2 }
 0x350   : > { %v887_v1 = vpop.xlane.xlu1 %886  ;;  %v748_v2 = vadd.f32 %v747_v0, %v1884_v32 }
 0x351   : > { %v876_v3 = vadd.f32 %v875_v63, %v874_v62  ;;  %v888_v5 = vrot.slane %v887_v1, 4 }
 0x352   : > { %v757_v6 = vadd.f32 %v748_v2, %v1713_v14 }
 0x353   : > { %v877_v7 = vrot.slane %v876_v3, 2  ;;  %v889_v9 = vadd.f32 %v888_v5, %v887_v1 }
 0x354   : > { %759 = vst [vmem:[#allocation2] sm:$0xff] %v757_v6 }
 0x355   : > { %v878_v4 = vadd.f32 %v877_v7, %v876_v3  ;;  %v890_v13 = vrot.slane %v889_v9, 2 }
 0x357   : > { %v891_v8 = vadd.f32 %v890_v13, %v889_v9  ;;  %v879_v10 = vrot.slane %v878_v4, 1 }
 0x359   : > { %v880_v11 = vadd.f32 %v879_v10, %v878_v4  ;;  %v892_v48 = vrot.slane %v891_v8, 1 }
 0x35b   : > { %1279 = vpush %v880_v11  ;;  %v893_v15 = vadd.f32 %v892_v48, %v891_v8 }
 0x35d   : > { %1281 = vpush %v893_v15 }
 0x38c   : > { %s1280_s15 = spop %1279 }
 0x38d   : > { %v882_v49 = vstv %s1280_s15 }
 0x38e   : > { %v896_v12 = vmul.f32 0.001953125, %v882_v49  ;;  %s1282_s17 = spop %1281 }
 0x38f   : > { %v895_v18 = vstv %s1282_s17 }
 0x390   : > { %v898_v19 = vmul.f32 %v896_v12, %v896_v12  ;;  %v897_v20 = vmul.f32 0.001953125, %v895_v18 }
 0x392   : > { %v899_v14 = vsub.f32 %v897_v20, %v898_v19 }
 0x394   : > { %v900_v21 = vmax.f32 %v899_v14, 0.0 }
 0x396   : > { %v901_v59 = vadd.f32 1e-05, %v900_v21 }
 0x398   : > { %1374 = vrsqrt.f32 %v901_v59  ;;  %vm908_vm2 = vweird.f32 %v901_v59 }
 0x39e   : > { %v1375_v22 = vpop.eup %1374 }
 0x39f   : > { %v903_v60 = vmul.f32 %v1375_v22, %v901_v59  ;;  %vm909_vm1 = vweird.f32 %v1375_v22 }
 0x3a0   : > { %vm910_vm3 = vmor %vm908_vm2, %vm909_vm1 }
 0x3a1   : > { %v904_v23 = vmul.f32 %v1375_v22, %v903_v60 }
 0x3a3   : > { %v905_v24 = vmul.f32 0.5, %v904_v23 }
 0x3a5   : > { %v906_v25 = vsub.f32 1.5, %v905_v24 }
 0x3a7   : > { %v907_v26 = vmul.f32 %v1375_v22, %v906_v25 }
 0x3a9   : > { %v911_v29 = vsel %vm910_vm3, %v1375_v22, %v907_v26 }
 0x3aa   : > { %v912_v30 = vmul.f32 %v911_v29, %v1845_v54 }
 0x3ac   : > { %v913_v31 = vmul.f32 %v912_v30, %v896_v12  ;;  %v915_v27 = vperm.slane %v912_v30, 0 }
 0x3ae   : > { %v914_v28 = vsub.f32 %v1850_v57, %v913_v31  ;;  %v916_v33 = vmul.f32 %v915_v27, %v1870_v38  ;;  %v917_v34 = vmul.f32 %v915_v27, %v1872_v39  ;;  %v952_v39 = vld [vmem:[#allocation3 + $0x10] sm:$0xff] }
 0x3b0   : > { %v918_v35 = vperm.slane %v914_v28, 0 }
 0x3b2   : > { %v919_v36 = vadd.f32 %v918_v35, %v916_v33  ;;  %v920_v41 = vadd.f32 %v918_v35, %v917_v34 }
 0x3b4   : > { %v921_v42 = vpack.c.bf16 %v920_v41, %v919_v36 }
 0x3b6   : > { %930 = vmatmul.bf16.vlgmr.msrb.gmra.mxu0 %v921_v42  ;;  %944 = vmatmul.bf16.vlgmr.msrb.gmra.mxu1 %v921_v42 }
 0x433   : > { %v931_v44 = vpop.f32.mrf.mxu0  ;;  %v945_v46 = vpop.f32.mrf.mxu1 }
 0x434   : > { %v932_v43 = vadd.f32 %v931_v44, %v1881_v47  ;;  %v946_v54 = vadd.f32 %v945_v46, %v1884_v32 }
 0x436   : > { %v953_v50 = vadd.f32 %v951_v40, %v932_v43  ;;  %v957_v57 = vadd.f32 %v946_v54, %v1717_v16 }
 0x438   : > { %955 = vst [vmem:[#allocation3 + $0x8] sm:$0xff] %v953_v50 }
 0x439   : > { %959 = vst [vmem:[#allocation2 + $0x18] sm:$0xff] %v957_v57 }
 0x43b   : > { %v933_v38 = vpop.f32.mrf.mxu0  ;;  %v947_v51 = vpop.f32.mrf.mxu1 }
 0x43c   : > { %v934_v52 = vadd.f32 %v933_v38, %v1881_v47  ;;  %v948_v37 = vadd.f32 %v947_v51, %v1884_v32 }
 0x43d   : > { %964 = sbr.rel (%p1235_p1) target bundleno = 1097 (0x449), region = 56 }
 0x43e   : > { %v954_v45 = vadd.f32 %v952_v39, %v934_v52  ;;  %v958_v55 = vadd.f32 %v948_v37, %v1719_v17 }
 0x440   : > { %956 = vst [vmem:[#allocation3 + $0x10] sm:$0xff] %v954_v45 }
 0x441   : > { %960 = vst [vmem:[#allocation2 + $0x8] sm:$0xff] %v958_v55 }
 0x442   : > { %v965_v56 = vld [vmem:[#allocation3] sm:$0xff]  ;;  %v966_v53 = vld [vmem:[#allocation3 + $0x18] sm:$0xff]  ;;  %v967_v16 = vld [vmem:[#allocation3 + $0x8] sm:$0xff] }
 0x443   : > { %969 = vst [vmem:[#allocation12] sm:$0xff] %v965_v56 }
 0x444   : > { %970 = vst [vmem:[#allocation12 + $0x8] sm:$0xff] %v966_v53 }
 0x445   : > { %971 = vst [vmem:[#allocation12 + $0x10] sm:$0xff] %v967_v16 }
 0x447   : > { %v968_v58 = vld [vmem:[#allocation3 + $0x10] sm:$0xff] }
 0x448   : > { %972 = vst [vmem:[#allocation12 + $0x18] sm:$0xff] %v968_v58 }
 0x449 PF: > { %s1938_s13 = sadd.s32 4294967295, %s1536_s29   ;;  %s984_s30 = sshll.u32 %s1931_s6, 4  ;;  %s985_s30 = int_to_ptr.hbm [resolvable:$true] %s984_s30 }
 0x44a   : > { %p1299_p2 = scmp.eq.s32.totalorder %s1938_s13, 3  ;;  %s1544_s22 = smov [#allocation12]  }
 0x44b   : > { %s982_s10 = sshll.u32 %s1544_s22, 4  ;;  %s1545_s28 = smov 128   ;;  %s983_s10 = int_to_ptr.vmem [resolvable:$true] %s982_s10 }
 0x44c   : > { %s1546_s14 = smov 8  }
 0x44d   : > { %1288 = dma.vmem_to_hbm [thread:$0]  (%p1299_p2), %s983_s10, 512, %s985_s30, [#allocation9], %s1545_s28, %s1545_s28, %s1546_s14  }
 0x44e   : > { %1511 = dma.done.wait (%p1299_p2), [#allocation9], 512  }
 0x44f   : > { %1513 = vsyncadd (%p1299_p2), [#allocation9], 4294966784 }
 0x450 PF: > { %s31_s29 = sadd.s32 1, %s1536_s29   ;;  %s1939_s25 = smov %s1520_s26 }
 0x451   : > { %p28_p3 = scmp.ge.s32.totalorder %s31_s29, 6   ;;  %s1940_s26 = smov %s1524_s27 }
 0x452   : > { %s1941_s27 = smov %s1636_s12  ;;  %s1942_s28 = smov %s1532_s0 }
 0x453   : > { %s1943_s0 = smov %s1945_s7  ;;  %30 = sbr.rel (!%p28_p3) target bundleno = 13 (0xd), region = 115 }
 0x458   :  { %1001 = vsyncpa [#allocation8], 1 }
 0x459   :  { %1003 = vsyncpa [#allocation8 + $0x1], 1 }
 0x45a   :  { %1004 = vsyncpa [#allocation11], 1 }
 0x45b   :  { %1006 = vsyncpa [#allocation11 + $0x1], 1 }
 0x45c   :  { %1007 = vsyncpa [#allocation9], 1 }
 0x45d   :  { %1009 = vsyncpa [#allocation9 + $0x1], 1 }

</bundles_post_ra>
